<compile_context>
chip_gen: v5e
topology: v5e:2x2
jax: 0.10.0
libtpu: 0.0.40
codegen_flags: <defaults>
</compile_context>

<pallas_src>
import functools

import jax
import jax.numpy as jnp
from jax.experimental import pallas as pl
from jax.experimental.pallas import tpu as pltpu


# ----------------------------------------------------------------------------
# Kernels
# ----------------------------------------------------------------------------
def _linear_stats_kernel(n_valid, x_ref, w_ref, b_ref, y_ref, s_ref, ss_ref):
    """y = x @ W + b ; accumulate per-feature sum / sumsq over valid rows."""
    i = pl.program_id(0)

    @pl.when(i == 0)
    def _init():
        s_ref[...] = jnp.zeros_like(s_ref)
        ss_ref[...] = jnp.zeros_like(ss_ref)

    # bf16 MXU matmul, f32 accumulation.
    y = jnp.dot(x_ref[...], w_ref[...], preferred_element_type=jnp.float32)
    y = y + b_ref[...]
    y_ref[...] = y

    tm = y.shape[0]
    rows = i * tm + jax.lax.broadcasted_iota(jnp.int32, (tm, 1), 0)
    ym = jnp.where(rows < n_valid, y, 0.0)           # mask padded rows (f32)
    s_ref[...] += jnp.sum(ym, axis=0, keepdims=True)
    ss_ref[...] += jnp.sum(ym * ym, axis=0, keepdims=True)


def _bn_relu_linear_stats_kernel(n_valid, y1_ref, sc_ref, sh_ref, w_ref, b_ref,
                                 y2_ref, s_ref, ss_ref):
    """a = relu(y1*scale + shift); y2 = a @ W2 + b2; accumulate BN2 stats."""
    i = pl.program_id(0)

    @pl.when(i == 0)
    def _init():
        s_ref[...] = jnp.zeros_like(s_ref)
        ss_ref[...] = jnp.zeros_like(ss_ref)

    a = jnp.maximum(y1_ref[...] * sc_ref[...] + sh_ref[...], 0.0)   # f32 VPU
    y = jnp.dot(a.astype(w_ref.dtype), w_ref[...],
                preferred_element_type=jnp.float32)
    y = y + b_ref[...]
    y2_ref[...] = y

    tm = y.shape[0]
    rows = i * tm + jax.lax.broadcasted_iota(jnp.int32, (tm, 1), 0)
    ym = jnp.where(rows < n_valid, y, 0.0)
    s_ref[...] += jnp.sum(ym, axis=0, keepdims=True)
    ss_ref[...] += jnp.sum(ym * ym, axis=0, keepdims=True)


def _bn_relu_kernel(y_ref, sc_ref, sh_ref, o_ref):
    """out = relu(y * scale + shift)."""
    o_ref[...] = jnp.maximum(y_ref[...] * sc_ref[...] + sh_ref[...],
                             0.0).astype(o_ref.dtype)


# ----------------------------------------------------------------------------
# Wrapper
# ----------------------------------------------------------------------------
def _round_up(x, m):
    return (x + m - 1) // m * m


def _pad2(a, rows, cols):
    return jnp.pad(a, ((0, rows - a.shape[0]), (0, cols - a.shape[1])))


def _pad_row(a, cols):
    return jnp.pad(a, ((0, cols - a.shape[0]),)).reshape(1, cols)


def _finalize_bn(s, ss, gamma, beta, n, eps):
    """Fold training-mode BN (batch stats, biased var) into scale/shift."""
    mean = s / n
    var = jnp.maximum(ss / n - mean * mean, 0.0)   # clamp: sumsq cancellation
    inv = jax.lax.rsqrt(var + eps)                 # EUP rsqrt
    scale = gamma * inv
    shift = beta - mean * scale
    return scale, shift, mean, var


def apply_node_func(h, w1, b1, gamma1, beta1, w2, b2, gamma2, beta2,
                    *, eps=1e-5, block_rows=256, return_batch_stats=False):
    """Forward pass of ApplyNodeFunc with a 2-layer MLP (DGL GIN).

    Weights are given in PyTorch nn.Linear layout: w1 (H, D_in), w2 (D_out, H).
    """
    n, d_in = h.shape
    d_hid = w1.shape[0]
    d_out = w2.shape[0]

    # Lane-dense padding of feature dims; row padding to the tile size.
    d_in_p = _round_up(d_in, 128)
    d_hid_p = _round_up(d_hid, 128)
    d_out_p = _round_up(d_out, 128)
    tm = min(block_rows, _round_up(n, 8))
    n_p = _round_up(n, tm)
    grid = (n_p // tm,)

    f32 = jnp.float32
    hb = _pad2(h, n_p, d_in_p).astype(jnp.bfloat16)
    w1t = _pad2(w1.T, d_in_p, d_hid_p).astype(jnp.bfloat16)   # (D_in, H)
    w2t = _pad2(w2.T, d_hid_p, d_out_p).astype(jnp.bfloat16)  # (H, D_out)
    b1p = _pad_row(b1.astype(f32), d_hid_p)
    g1p = _pad_row(gamma1.astype(f32), d_hid_p)
    bt1p = _pad_row(beta1.astype(f32), d_hid_p)
    b2p = _pad_row(b2.astype(f32), d_out_p)
    g2p = _pad_row(gamma2.astype(f32), d_out_p)
    bt2p = _pad_row(beta2.astype(f32), d_out_p)

    seq = pltpu.CompilerParams(dimension_semantics=("arbitrary",))
    par = pltpu.CompilerParams(dimension_semantics=("parallel",))

    # ---- pass 1: Linear1 + BN1 partial stats --------------------------------
    y1, s1, ss1 = pl.pallas_call(
        functools.partial(_linear_stats_kernel, n),
        grid_spec=pltpu.PrefetchScalarGridSpec(
            num_scalar_prefetch=0,
            grid=grid,
            in_specs=[
                pl.BlockSpec((tm, d_in_p), lambda i: (i, 0)),
                pl.BlockSpec((d_in_p, d_hid_p), lambda i: (0, 0)),  # resident
                pl.BlockSpec((1, d_hid_p), lambda i: (0, 0)),       # resident
            ],
            out_specs=[
                pl.BlockSpec((tm, d_hid_p), lambda i: (i, 0)),
                pl.BlockSpec((1, d_hid_p), lambda i: (0, 0)),       # accumulator
                pl.BlockSpec((1, d_hid_p), lambda i: (0, 0)),       # accumulator
            ],
        ),
        out_shape=[
            jax.ShapeDtypeStruct((n_p, d_hid_p), f32),
            jax.ShapeDtypeStruct((1, d_hid_p), f32),
            jax.ShapeDtypeStruct((1, d_hid_p), f32),
        ],
        compiler_params=seq,
    )(hb, w1t, b1p)

    sc1, sh1, mean1, var1 = _finalize_bn(s1, ss1, g1p, bt1p, n, eps)

    # ---- pass 2: BN1 + ReLU + Linear2 + BN2 partial stats -------------------
    y2, s2, ss2 = pl.pallas_call(
        functools.partial(_bn_relu_linear_stats_kernel, n),
        grid_spec=pltpu.PrefetchScalarGridSpec(
            num_scalar_prefetch=0,
            grid=grid,
            in_specs=[
                pl.BlockSpec((tm, d_hid_p), lambda i: (i, 0)),
                pl.BlockSpec((1, d_hid_p), lambda i: (0, 0)),
                pl.BlockSpec((1, d_hid_p), lambda i: (0, 0)),
                pl.BlockSpec((d_hid_p, d_out_p), lambda i: (0, 0)),
                pl.BlockSpec((1, d_out_p), lambda i: (0, 0)),
            ],
            out_specs=[
                pl.BlockSpec((tm, d_out_p), lambda i: (i, 0)),
                pl.BlockSpec((1, d_out_p), lambda i: (0, 0)),
                pl.BlockSpec((1, d_out_p), lambda i: (0, 0)),
            ],
        ),
        out_shape=[
            jax.ShapeDtypeStruct((n_p, d_out_p), f32),
            jax.ShapeDtypeStruct((1, d_out_p), f32),
            jax.ShapeDtypeStruct((1, d_out_p), f32),
        ],
        compiler_params=seq,
    )(y1, sc1, sh1, w2t, b2p)

    sc2, sh2, mean2, var2 = _finalize_bn(s2, ss2, g2p, bt2p, n, eps)

    # ---- pass 3: epilogue BN2 + ReLU ----------------------------------------
    out_p = pl.pallas_call(
        _bn_relu_kernel,
        grid_spec=pltpu.PrefetchScalarGridSpec(
            num_scalar_prefetch=0,
            grid=grid,
            in_specs=[
                pl.BlockSpec((tm, d_out_p), lambda i: (i, 0)),
                pl.BlockSpec((1, d_out_p), lambda i: (0, 0)),
                pl.BlockSpec((1, d_out_p), lambda i: (0, 0)),
            ],
            out_specs=pl.BlockSpec((tm, d_out_p), lambda i: (i, 0)),
        ),
        out_shape=jax.ShapeDtypeStruct((n_p, d_out_p), f32),
        compiler_params=par,
    )(y2, sc2, sh2)

    out = out_p[:n, :d_out]
    if return_batch_stats:
        # TODO(synk): PyTorch training-mode BN also updates running_mean/var
        # (EMA with *unbiased* variance); that state update is left to the
        # caller using these batch stats.
        stats = {
            "mean1": mean1[0, :d_hid], "var1": var1[0, :d_hid],
            "mean2": mean2[0, :d_out], "var2": var2[0, :d_out],
        }
        return out, stats
    return out


# ----------------------------------------------------------------------------
# Pure-JAX reference (same bf16-matmul / f32-stats numerics)
# ----------------------------------------------------------------------------
def reference_apply_node_func(h, w1, b1, g1, bt1, w2, b2, g2, bt2, eps=1e-5):
    def bn_relu(y, g, b):
        n = y.shape[0]
        mean = jnp.sum(y, axis=0) / n
        var = jnp.maximum(jnp.sum(y * y, axis=0) / n - mean * mean, 0.0)
        inv = jax.lax.rsqrt(var + eps)
        scale = g * inv
        shift = b - mean * scale
        return jnp.maximum(y * scale + shift, 0.0)

    x = h.astype(jnp.bfloat16)
    y1 = jnp.dot(x, w1.T.astype(jnp.bfloat16),
                 preferred_element_type=jnp.float32) + b1
    a = bn_relu(y1, g1, bt1)
    y2 = jnp.dot(a.astype(jnp.bfloat16), w2.T.astype(jnp.bfloat16),
                 preferred_element_type=jnp.float32) + b2
    return bn_relu(y2, g2, bt2)


# ----------------------------------------------------------------------------
# Demo
# ----------------------------------------------------------------------------
if __name__ == "__main__":
    key = jax.random.PRNGKey(0)
    ks = jax.random.split(key, 9)

    N, D_IN, D_HID, D_OUT = 512, 128, 256, 128
    h = jax.random.normal(ks[0], (N, D_IN), jnp.float32)
    w1 = jax.random.normal(ks[1], (D_HID, D_IN), jnp.float32) / jnp.sqrt(D_IN)
    b1 = 0.1 * jax.random.normal(ks[2], (D_HID,), jnp.float32)
    g1 = 1.0 + 0.1 * jax.random.normal(ks[3], (D_HID,), jnp.float32)
    bt1 = 0.1 * jax.random.normal(ks[4], (D_HID,), jnp.float32)
    w2 = jax.random.normal(ks[5], (D_OUT, D_HID), jnp.float32) / jnp.sqrt(D_HID)
    b2 = 0.1 * jax.random.normal(ks[6], (D_OUT,), jnp.float32)
    g2 = 1.0 + 0.1 * jax.random.normal(ks[7], (D_OUT,), jnp.float32)
    bt2 = 0.1 * jax.random.normal(ks[8], (D_OUT,), jnp.float32)

    fn = jax.jit(apply_node_func)
    out = fn(h, w1, b1, g1, bt1, w2, b2, g2, bt2)
    out = jax.block_until_ready(out)
    assert out.shape == (N, D_OUT)

    ref = reference_apply_node_func(h, w1, b1, g1, bt1, w2, b2, g2, bt2)
    ref = jax.block_until_ready(ref)
    if not bool(jnp.allclose(out, ref, rtol=2e-2, atol=2e-2)):
        max_err = float(jnp.max(jnp.abs(out - ref)))
        raise RuntimeError(f"mismatch vs reference, max abs err = {max_err}")

    print("KERNEL_OK")
</pallas_src>

<mosaic_0001>
module attributes {stable_mosaic.version = 11 : i64} {
  func.func @_linear_stats_kernel(%arg0: i32, %arg1: memref<256x128xbf16, #tpu.memory_space<vmem>>, %arg2: memref<128x256xbf16, #tpu.memory_space<vmem>>, %arg3: memref<1x256xf32, #tpu.memory_space<vmem>>, %arg4: memref<256x256xf32, #tpu.memory_space<vmem>>, %arg5: memref<1x256xf32, #tpu.memory_space<vmem>>, %arg6: memref<1x256xf32, #tpu.memory_space<vmem>>) attributes {dimension_semantics = [#tpu.dimension_semantics<arbitrary>], iteration_bounds = array<i64: 2>, scalar_prefetch = 0 : i64, scratch_operands = 0 : i64, tpu.core_type = #tpu.core_type<tc>, window_params = [{transform_indices = @transform_0, window_bounds = array<i64: 256, 128>}, {pipeline_mode = #tpu.pipeline_mode<synchronous>, transform_indices = @transform_1, window_bounds = array<i64: 128, 256>}, {pipeline_mode = #tpu.pipeline_mode<synchronous>, transform_indices = @transform_2, window_bounds = array<i64: 1, 256>}, {transform_indices = @transform_3, window_bounds = array<i64: 256, 256>}, {pipeline_mode = #tpu.pipeline_mode<synchronous>, transform_indices = @transform_4, window_bounds = array<i64: 1, 256>}, {pipeline_mode = #tpu.pipeline_mode<synchronous>, transform_indices = @transform_5, window_bounds = array<i64: 1, 256>}]} {
    %c0_i32 = arith.constant 0 : i32
    %0 = arith.cmpi eq, %arg0, %c0_i32 : i32
    %1 = arith.extui %0 : i1 to i32
    %c0_i32_0 = arith.constant 0 : i32
    %2 = arith.cmpi ne, %1, %c0_i32_0 : i32
    scf.if %2 {
      %cst_19 = arith.constant 0.000000e+00 : f32
      %31 = vector.broadcast %cst_19 : f32 to vector<1x256xf32>
      %c0_20 = arith.constant 0 : index
      %c0_21 = arith.constant 0 : index
      %32 = vector.load %arg5[%c0_20, %c0_21] : memref<1x256xf32, #tpu.memory_space<vmem>>, vector<1x256xf32>
      tpu.vector_store %arg5[%c0_20, %c0_21], %31 {strides = array<i32>} : memref<1x256xf32, #tpu.memory_space<vmem>>, vector<1x256xf32>,
      %cst_22 = arith.constant 0.000000e+00 : f32
      %33 = vector.broadcast %cst_22 : f32 to vector<1x256xf32>
      %c0_23 = arith.constant 0 : index
      %c0_24 = arith.constant 0 : index
      %34 = vector.load %arg6[%c0_23, %c0_24] : memref<1x256xf32, #tpu.memory_space<vmem>>, vector<1x256xf32>
      tpu.vector_store %arg6[%c0_23, %c0_24], %33 {strides = array<i32>} : memref<1x256xf32, #tpu.memory_space<vmem>>, vector<1x256xf32>,
    } else {
    }
    %c0 = arith.constant 0 : index
    %c0_1 = arith.constant 0 : index
    %3 = vector.load %arg1[%c0, %c0_1] : memref<256x128xbf16, #tpu.memory_space<vmem>>, vector<256x128xbf16>
    %c0_2 = arith.constant 0 : index
    %c0_3 = arith.constant 0 : index
    %4 = vector.load %arg2[%c0_2, %c0_3] : memref<128x256xbf16, #tpu.memory_space<vmem>>, vector<128x256xbf16>
    %cst = arith.constant dense<0.000000e+00> : vector<256x256xf32>
    %5 = tpu.matmul %3, %4, %cst {dimension_numbers = #tpu.dot_dimension_numbers<[1], [0], [0], [1], [0, 0, 1, 1], [], []>} : vector<256x128xbf16>, vector<128x256xbf16>, vector<256x256xf32> -> vector<256x256xf32>
    %c0_4 = arith.constant 0 : index
    %c0_5 = arith.constant 0 : index
    %6 = vector.load %arg3[%c0_4, %c0_5] : memref<1x256xf32, #tpu.memory_space<vmem>>, vector<1x256xf32>
    %7 = vector.broadcast %6 : vector<1x256xf32> to vector<256x256xf32>
    %8 = arith.addf %5, %7 : vector<256x256xf32>
    %c0_6 = arith.constant 0 : index
    %c0_7 = arith.constant 0 : index
    %9 = vector.load %arg4[%c0_6, %c0_7] : memref<256x256xf32, #tpu.memory_space<vmem>>, vector<256x256xf32>
    tpu.vector_store %arg4[%c0_6, %c0_7], %8 {strides = array<i32>} : memref<256x256xf32, #tpu.memory_space<vmem>>, vector<256x256xf32>,
    %c256_i32 = arith.constant 256 : i32
    %10 = arith.muli %arg0, %c256_i32 : i32
    %11 = tpu.iota {dimensions = array<i32: 0>} : vector<256x1xi32>
    %12 = vector.broadcast %10 : i32 to vector<256x1xi32>
    %13 = arith.addi %12, %11 : vector<256x1xi32>
    %c512_i32 = arith.constant 512 : i32
    %14 = vector.broadcast %c512_i32 : i32 to vector<256x1xi32>
    %15 = arith.cmpi slt, %13, %14 : vector<256x1xi32>
    %cst_8 = arith.constant 0.000000e+00 : f32
    %16 = vector.shape_cast %15 : vector<256x1xi1> to vector<256x1xi1>
    %17 = vector.broadcast %16 : vector<256x1xi1> to vector<256x256xi1>
    %18 = vector.broadcast %cst_8 : f32 to vector<256x256xf32>
    %19 = arith.select %17, %8, %18 : vector<256x256xi1>, vector<256x256xf32>
    %c0_9 = arith.constant 0 : index
    %c0_10 = arith.constant 0 : index
    %20 = vector.load %arg5[%c0_9, %c0_10] : memref<1x256xf32, #tpu.memory_space<vmem>>, vector<1x256xf32>
    %cst_11 = arith.constant dense<0.000000e+00> : vector<256xf32>
    %21 = vector.multi_reduction <add>, %19, %cst_11 [0] : vector<256x256xf32> to vector<256xf32>
    %22 = vector.shape_cast %21 : vector<256xf32> to vector<1x256xf32>
    %23 = arith.addf %20, %22 : vector<1x256xf32>
    %c0_12 = arith.constant 0 : index
    %c0_13 = arith.constant 0 : index
    %24 = vector.load %arg5[%c0_12, %c0_13] : memref<1x256xf32, #tpu.memory_space<vmem>>, vector<1x256xf32>
    tpu.vector_store %arg5[%c0_12, %c0_13], %23 {strides = array<i32>} : memref<1x256xf32, #tpu.memory_space<vmem>>, vector<1x256xf32>,
    %c0_14 = arith.constant 0 : index
    %c0_15 = arith.constant 0 : index
    %25 = vector.load %arg6[%c0_14, %c0_15] : memref<1x256xf32, #tpu.memory_space<vmem>>, vector<1x256xf32>
    %26 = arith.mulf %19, %19 : vector<256x256xf32>
    %cst_16 = arith.constant dense<0.000000e+00> : vector<256xf32>
    %27 = vector.multi_reduction <add>, %26, %cst_16 [0] : vector<256x256xf32> to vector<256xf32>
    %28 = vector.shape_cast %27 : vector<256xf32> to vector<1x256xf32>
    %29 = arith.addf %25, %28 : vector<1x256xf32>
    %c0_17 = arith.constant 0 : index
    %c0_18 = arith.constant 0 : index
    %30 = vector.load %arg6[%c0_17, %c0_18] : memref<1x256xf32, #tpu.memory_space<vmem>>, vector<1x256xf32>
    tpu.vector_store %arg6[%c0_17, %c0_18], %29 {strides = array<i32>} : memref<1x256xf32, #tpu.memory_space<vmem>>, vector<1x256xf32>,
    return
  }
  func.func @transform_0(%arg0: i32) -> (i32, i32) {
    %c0_i32 = arith.constant 0 : i32
    %c0_i32_0 = arith.constant 0 : i32
    return %arg0, %c0_i32 : i32, i32
  }
  func.func @transform_1(%arg0: i32) -> (i32, i32) {
    %c0_i32 = arith.constant 0 : i32
    %c0_i32_0 = arith.constant 0 : i32
    %c0_i32_1 = arith.constant 0 : i32
    return %c0_i32, %c0_i32_0 : i32, i32
  }
  func.func @transform_2(%arg0: i32) -> (i32, i32) {
    %c0_i32 = arith.constant 0 : i32
    %c0_i32_0 = arith.constant 0 : i32
    %c0_i32_1 = arith.constant 0 : i32
    return %c0_i32, %c0_i32_0 : i32, i32
  }
  func.func @transform_3(%arg0: i32) -> (i32, i32) {
    %c0_i32 = arith.constant 0 : i32
    %c0_i32_0 = arith.constant 0 : i32
    return %arg0, %c0_i32 : i32, i32
  }
  func.func @transform_4(%arg0: i32) -> (i32, i32) {
    %c0_i32 = arith.constant 0 : i32
    %c0_i32_0 = arith.constant 0 : i32
    %c0_i32_1 = arith.constant 0 : i32
    return %c0_i32, %c0_i32_0 : i32, i32
  }
  func.func @transform_5(%arg0: i32) -> (i32, i32) {
    %c0_i32 = arith.constant 0 : i32
    %c0_i32_0 = arith.constant 0 : i32
    %c0_i32_1 = arith.constant 0 : i32
    return %c0_i32, %c0_i32_0 : i32, i32
  }
}

module attributes {stable_mosaic.version = 11 : i64} {
  func.func @_bn_relu_linear_stats_kernel(%arg0: i32, %arg1: memref<256x256xf32, #tpu.memory_space<vmem>>, %arg2: memref<1x256xf32, #tpu.memory_space<vmem>>, %arg3: memref<1x256xf32, #tpu.memory_space<vmem>>, %arg4: memref<256x128xbf16, #tpu.memory_space<vmem>>, %arg5: memref<1x128xf32, #tpu.memory_space<vmem>>, %arg6: memref<256x128xf32, #tpu.memory_space<vmem>>, %arg7: memref<1x128xf32, #tpu.memory_space<vmem>>, %arg8: memref<1x128xf32, #tpu.memory_space<vmem>>) attributes {dimension_semantics = [#tpu.dimension_semantics<arbitrary>], iteration_bounds = array<i64: 2>, scalar_prefetch = 0 : i64, scratch_operands = 0 : i64, tpu.core_type = #tpu.core_type<tc>, window_params = [{transform_indices = @transform_0, window_bounds = array<i64: 256, 256>}, {pipeline_mode = #tpu.pipeline_mode<synchronous>, transform_indices = @transform_1, window_bounds = array<i64: 1, 256>}, {pipeline_mode = #tpu.pipeline_mode<synchronous>, transform_indices = @transform_2, window_bounds = array<i64: 1, 256>}, {pipeline_mode = #tpu.pipeline_mode<synchronous>, transform_indices = @transform_3, window_bounds = array<i64: 256, 128>}, {pipeline_mode = #tpu.pipeline_mode<synchronous>, transform_indices = @transform_4, window_bounds = array<i64: 1, 128>}, {transform_indices = @transform_5, window_bounds = array<i64: 256, 128>}, {pipeline_mode = #tpu.pipeline_mode<synchronous>, transform_indices = @transform_6, window_bounds = array<i64: 1, 128>}, {pipeline_mode = #tpu.pipeline_mode<synchronous>, transform_indices = @transform_7, window_bounds = array<i64: 1, 128>}]} {
    %c0_i32 = arith.constant 0 : i32
    %0 = arith.cmpi eq, %arg0, %c0_i32 : i32
    %1 = arith.extui %0 : i1 to i32
    %c0_i32_0 = arith.constant 0 : i32
    %2 = arith.cmpi ne, %1, %c0_i32_0 : i32
    scf.if %2 {
      %cst_24 = arith.constant 0.000000e+00 : f32
      %40 = vector.broadcast %cst_24 : f32 to vector<1x128xf32>
      %c0_25 = arith.constant 0 : index
      %c0_26 = arith.constant 0 : index
      %41 = vector.load %arg7[%c0_25, %c0_26] : memref<1x128xf32, #tpu.memory_space<vmem>>, vector<1x128xf32>
      tpu.vector_store %arg7[%c0_25, %c0_26], %40 {strides = array<i32>} : memref<1x128xf32, #tpu.memory_space<vmem>>, vector<1x128xf32>,
      %cst_27 = arith.constant 0.000000e+00 : f32
      %42 = vector.broadcast %cst_27 : f32 to vector<1x128xf32>
      %c0_28 = arith.constant 0 : index
      %c0_29 = arith.constant 0 : index
      %43 = vector.load %arg8[%c0_28, %c0_29] : memref<1x128xf32, #tpu.memory_space<vmem>>, vector<1x128xf32>
      tpu.vector_store %arg8[%c0_28, %c0_29], %42 {strides = array<i32>} : memref<1x128xf32, #tpu.memory_space<vmem>>, vector<1x128xf32>,
    } else {
    }
    %c0 = arith.constant 0 : index
    %c0_1 = arith.constant 0 : index
    %3 = vector.load %arg1[%c0, %c0_1] : memref<256x256xf32, #tpu.memory_space<vmem>>, vector<256x256xf32>
    %c0_2 = arith.constant 0 : index
    %c0_3 = arith.constant 0 : index
    %4 = vector.load %arg2[%c0_2, %c0_3] : memref<1x256xf32, #tpu.memory_space<vmem>>, vector<1x256xf32>
    %5 = vector.broadcast %4 : vector<1x256xf32> to vector<256x256xf32>
    %6 = arith.mulf %3, %5 : vector<256x256xf32>
    %c0_4 = arith.constant 0 : index
    %c0_5 = arith.constant 0 : index
    %7 = vector.load %arg3[%c0_4, %c0_5] : memref<1x256xf32, #tpu.memory_space<vmem>>, vector<1x256xf32>
    %8 = vector.broadcast %7 : vector<1x256xf32> to vector<256x256xf32>
    %9 = arith.addf %6, %8 : vector<256x256xf32>
    %cst = arith.constant 0.000000e+00 : f32
    %10 = vector.broadcast %cst : f32 to vector<256x256xf32>
    %11 = arith.maximumf %9, %10 : vector<256x256xf32>
    %12 = arith.truncf %11 : vector<256x256xf32> to vector<256x256xbf16>
    %c0_6 = arith.constant 0 : index
    %c0_7 = arith.constant 0 : index
    %13 = vector.load %arg4[%c0_6, %c0_7] : memref<256x128xbf16, #tpu.memory_space<vmem>>, vector<256x128xbf16>
    %cst_8 = arith.constant dense<0.000000e+00> : vector<256x128xf32>
    %14 = tpu.matmul %12, %13, %cst_8 {dimension_numbers = #tpu.dot_dimension_numbers<[1], [0], [0], [1], [0, 0, 1, 1], [], []>} : vector<256x256xbf16>, vector<256x128xbf16>, vector<256x128xf32> -> vector<256x128xf32>
    %c0_9 = arith.constant 0 : index
    %c0_10 = arith.constant 0 : index
    %15 = vector.load %arg5[%c0_9, %c0_10] : memref<1x128xf32, #tpu.memory_space<vmem>>, vector<1x128xf32>
    %16 = vector.broadcast %15 : vector<1x128xf32> to vector<256x128xf32>
    %17 = arith.addf %14, %16 : vector<256x128xf32>
    %c0_11 = arith.constant 0 : index
    %c0_12 = arith.constant 0 : index
    %18 = vector.load %arg6[%c0_11, %c0_12] : memref<256x128xf32, #tpu.memory_space<vmem>>, vector<256x128xf32>
    tpu.vector_store %arg6[%c0_11, %c0_12], %17 {strides = array<i32>} : memref<256x128xf32, #tpu.memory_space<vmem>>, vector<256x128xf32>,
    %c256_i32 = arith.constant 256 : i32
    %19 = arith.muli %arg0, %c256_i32 : i32
    %20 = tpu.iota {dimensions = array<i32: 0>} : vector<256x1xi32>
    %21 = vector.broadcast %19 : i32 to vector<256x1xi32>
    %22 = arith.addi %21, %20 : vector<256x1xi32>
    %c512_i32 = arith.constant 512 : i32
    %23 = vector.broadcast %c512_i32 : i32 to vector<256x1xi32>
    %24 = arith.cmpi slt, %22, %23 : vector<256x1xi32>
    %cst_13 = arith.constant 0.000000e+00 : f32
    %25 = vector.shape_cast %24 : vector<256x1xi1> to vector<256x1xi1>
    %26 = vector.broadcast %25 : vector<256x1xi1> to vector<256x128xi1>
    %27 = vector.broadcast %cst_13 : f32 to vector<256x128xf32>
    %28 = arith.select %26, %17, %27 : vector<256x128xi1>, vector<256x128xf32>
    %c0_14 = arith.constant 0 : index
    %c0_15 = arith.constant 0 : index
    %29 = vector.load %arg7[%c0_14, %c0_15] : memref<1x128xf32, #tpu.memory_space<vmem>>, vector<1x128xf32>
    %cst_16 = arith.constant dense<0.000000e+00> : vector<128xf32>
    %30 = vector.multi_reduction <add>, %28, %cst_16 [0] : vector<256x128xf32> to vector<128xf32>
    %31 = vector.shape_cast %30 : vector<128xf32> to vector<1x128xf32>
    %32 = arith.addf %29, %31 : vector<1x128xf32>
    %c0_17 = arith.constant 0 : index
    %c0_18 = arith.constant 0 : index
    %33 = vector.load %arg7[%c0_17, %c0_18] : memref<1x128xf32, #tpu.memory_space<vmem>>, vector<1x128xf32>
    tpu.vector_store %arg7[%c0_17, %c0_18], %32 {strides = array<i32>} : memref<1x128xf32, #tpu.memory_space<vmem>>, vector<1x128xf32>,
    %c0_19 = arith.constant 0 : index
    %c0_20 = arith.constant 0 : index
    %34 = vector.load %arg8[%c0_19, %c0_20] : memref<1x128xf32, #tpu.memory_space<vmem>>, vector<1x128xf32>
    %35 = arith.mulf %28, %28 : vector<256x128xf32>
    %cst_21 = arith.constant dense<0.000000e+00> : vector<128xf32>
    %36 = vector.multi_reduction <add>, %35, %cst_21 [0] : vector<256x128xf32> to vector<128xf32>
    %37 = vector.shape_cast %36 : vector<128xf32> to vector<1x128xf32>
    %38 = arith.addf %34, %37 : vector<1x128xf32>
    %c0_22 = arith.constant 0 : index
    %c0_23 = arith.constant 0 : index
    %39 = vector.load %arg8[%c0_22, %c0_23] : memref<1x128xf32, #tpu.memory_space<vmem>>, vector<1x128xf32>
    tpu.vector_store %arg8[%c0_22, %c0_23], %38 {strides = array<i32>} : memref<1x128xf32, #tpu.memory_space<vmem>>, vector<1x128xf32>,
    return
  }
  func.func @transform_0(%arg0: i32) -> (i32, i32) {
    %c0_i32 = arith.constant 0 : i32
    %c0_i32_0 = arith.constant 0 : i32
    return %arg0, %c0_i32 : i32, i32
  }
  func.func @transform_1(%arg0: i32) -> (i32, i32) {
    %c0_i32 = arith.constant 0 : i32
    %c0_i32_0 = arith.constant 0 : i32
    %c0_i32_1 = arith.constant 0 : i32
    return %c0_i32, %c0_i32_0 : i32, i32
  }
  func.func @transform_2(%arg0: i32) -> (i32, i32) {
    %c0_i32 = arith.constant 0 : i32
    %c0_i32_0 = arith.constant 0 : i32
    %c0_i32_1 = arith.constant 0 : i32
    return %c0_i32, %c0_i32_0 : i32, i32
  }
  func.func @transform_3(%arg0: i32) -> (i32, i32) {
    %c0_i32 = arith.constant 0 : i32
    %c0_i32_0 = arith.constant 0 : i32
    %c0_i32_1 = arith.constant 0 : i32
    return %c0_i32, %c0_i32_0 : i32, i32
  }
  func.func @transform_4(%arg0: i32) -> (i32, i32) {
    %c0_i32 = arith.constant 0 : i32
    %c0_i32_0 = arith.constant 0 : i32
    %c0_i32_1 = arith.constant 0 : i32
    return %c0_i32, %c0_i32_0 : i32, i32
  }
  func.func @transform_5(%arg0: i32) -> (i32, i32) {
    %c0_i32 = arith.constant 0 : i32
    %c0_i32_0 = arith.constant 0 : i32
    return %arg0, %c0_i32 : i32, i32
  }
  func.func @transform_6(%arg0: i32) -> (i32, i32) {
    %c0_i32 = arith.constant 0 : i32
    %c0_i32_0 = arith.constant 0 : i32
    %c0_i32_1 = arith.constant 0 : i32
    return %c0_i32, %c0_i32_0 : i32, i32
  }
  func.func @transform_7(%arg0: i32) -> (i32, i32) {
    %c0_i32 = arith.constant 0 : i32
    %c0_i32_0 = arith.constant 0 : i32
    %c0_i32_1 = arith.constant 0 : i32
    return %c0_i32, %c0_i32_0 : i32, i32
  }
}

module attributes {stable_mosaic.version = 11 : i64} {
  func.func @_bn_relu_kernel(%arg0: i32, %arg1: memref<256x128xf32, #tpu.memory_space<vmem>>, %arg2: memref<1x128xf32, #tpu.memory_space<vmem>>, %arg3: memref<1x128xf32, #tpu.memory_space<vmem>>, %arg4: memref<256x128xf32, #tpu.memory_space<vmem>>) attributes {dimension_semantics = [#tpu.dimension_semantics<parallel>], iteration_bounds = array<i64: 2>, scalar_prefetch = 0 : i64, scratch_operands = 0 : i64, tpu.core_type = #tpu.core_type<tc>, window_params = [{transform_indices = @transform_0, window_bounds = array<i64: 256, 128>}, {pipeline_mode = #tpu.pipeline_mode<synchronous>, transform_indices = @transform_1, window_bounds = array<i64: 1, 128>}, {pipeline_mode = #tpu.pipeline_mode<synchronous>, transform_indices = @transform_2, window_bounds = array<i64: 1, 128>}, {transform_indices = @transform_3, window_bounds = array<i64: 256, 128>}]} {
    %c0 = arith.constant 0 : index
    %c0_0 = arith.constant 0 : index
    %0 = vector.load %arg1[%c0, %c0_0] : memref<256x128xf32, #tpu.memory_space<vmem>>, vector<256x128xf32>
    %c0_1 = arith.constant 0 : index
    %c0_2 = arith.constant 0 : index
    %1 = vector.load %arg2[%c0_1, %c0_2] : memref<1x128xf32, #tpu.memory_space<vmem>>, vector<1x128xf32>
    %2 = vector.broadcast %1 : vector<1x128xf32> to vector<256x128xf32>
    %3 = arith.mulf %0, %2 : vector<256x128xf32>
    %c0_3 = arith.constant 0 : index
    %c0_4 = arith.constant 0 : index
    %4 = vector.load %arg3[%c0_3, %c0_4] : memref<1x128xf32, #tpu.memory_space<vmem>>, vector<1x128xf32>
    %5 = vector.broadcast %4 : vector<1x128xf32> to vector<256x128xf32>
    %6 = arith.addf %3, %5 : vector<256x128xf32>
    %cst = arith.constant 0.000000e+00 : f32
    %7 = vector.broadcast %cst : f32 to vector<256x128xf32>
    %8 = arith.maximumf %6, %7 : vector<256x128xf32>
    %c0_5 = arith.constant 0 : index
    %c0_6 = arith.constant 0 : index
    %9 = vector.load %arg4[%c0_5, %c0_6] : memref<256x128xf32, #tpu.memory_space<vmem>>, vector<256x128xf32>
    tpu.vector_store %arg4[%c0_5, %c0_6], %8 {strides = array<i32>} : memref<256x128xf32, #tpu.memory_space<vmem>>, vector<256x128xf32>,
    return
  }
  func.func @transform_0(%arg0: i32) -> (i32, i32) {
    %c0_i32 = arith.constant 0 : i32
    %c0_i32_0 = arith.constant 0 : i32
    return %arg0, %c0_i32 : i32, i32
  }
  func.func @transform_1(%arg0: i32) -> (i32, i32) {
    %c0_i32 = arith.constant 0 : i32
    %c0_i32_0 = arith.constant 0 : i32
    %c0_i32_1 = arith.constant 0 : i32
    return %c0_i32, %c0_i32_0 : i32, i32
  }
  func.func @transform_2(%arg0: i32) -> (i32, i32) {
    %c0_i32 = arith.constant 0 : i32
    %c0_i32_0 = arith.constant 0 : i32
    %c0_i32_1 = arith.constant 0 : i32
    return %c0_i32, %c0_i32_0 : i32, i32
  }
  func.func @transform_3(%arg0: i32) -> (i32, i32) {
    %c0_i32 = arith.constant 0 : i32
    %c0_i32_0 = arith.constant 0 : i32
    return %arg0, %c0_i32 : i32, i32
  }
}

</mosaic_0001>

<bundles_post_ra>
// kernel: apply_node_func.5
= control target key start
LH: loop header
LB: loop body
LE: loop exit
PB: predicated region body
PF: predicated region fallthrough
CT: control target
= control target key end

     0   :  { %8 = vsyncpa [#allocation3], 0  ;;  %s794_s0 = inlined_call_operand.vmem [shape: f32[512,128], index: 0, kind: input, shape index: {}]   ;;  %s795_s1 = inlined_call_operand.vmem [shape: f32[1,128], index: 1, kind: input, shape index: {}]   ;;  %s796_s2 = inlined_call_operand.vmem [shape: f32[1,128], index: 2, kind: input, shape index: {}]   ;;  %s797_s3 = inlined_call_operand.hbm [shape: f32[512,128], index: 3, kind: output, shape index: {}]  }
   0x1   :  { %10 = vsyncpa [#allocation3 + $0x1], 0  ;;  %s560_s12 = smov 0   ;;  %s562_s13 = smov 0  }
   0x2   :  { %s564_s14 = smov 0   ;;  %s566_s15 = smov 0  }
   0x3 LB: > { %s581_s16 = sadd.s32 4294967295, %s536_s15   ;;  %s418_s17 = sadd.s32 4294967294, %s536_s15   ;;  %s536_s15 = sphi %s566_s15, %s803_s15   ;;  %s532_s14 = sphi %s564_s14, %s802_s14   ;;  %s528_s13 = sphi %s562_s13, %s801_s13   ;;  %s524_s12 = sphi %s560_s12, %s800_s12  }
   0x4   : > { %s585_s18 = sadd.s32 1, %s536_s15   ;;  %s91_s19 = sadd.s32 1, %s532_s14 }
   0x5   : > { %s88_s20 = ssub.s32 %s536_s15, %s585_s18  ;;  %p101_p0 = scmp.ne.s32.totalorder %s532_s14, %s528_s13 }
   0x6   : > { %p89_p1 = scmp.eq.s32.totalorder %s88_s20, 0  ;;  %p102_p2 = scmp.eq.s32.totalorder %s581_s16, 1 }
   0x7   : > { %p107_p3 = scmp.ne.s32.totalorder %s528_s13, %s524_s12  ;;  %p108_p4 = scmp.eq.s32.totalorder %s418_s17, 1 }
   0x8   : > { %s596_s21 = scalar_select %p89_p1, %s532_s14, %s91_s19  }
   0x9   : > { %p598_p5 = por %p102_p2, %p101_p0  ;;  %p602_p6 = por %p108_p4, %p107_p3 }
   0xa   : > { %p421_p7 = scmp.ge.s32.totalorder %s536_s15, 1  ;;  %p141_p8 = scmp.lt.s32.totalorder %s536_s15, 3 }
   0xc   : > { %p142_p9 = pnand %p421_p7, %p141_p8 }
   0xd   : > { %s423_s24 = sshll.u32 (!%p142_p9), %s581_s16, 5  ;;  %s162_s27 = sand.u32 (!%p142_p9), 1, %s528_s13  }
   0xe   : > { %145 = sbr.rel (%p142_p9) target bundleno = 64 (0x40), region = 32  ;;  %p166_p10 = scmp.lt.s32.totalorder (!%p142_p9), %s423_s24, 63 }
   0xf   : > { %s630_s7 = sshll.u32 (!%p142_p9), %s162_s27, 8  ;;  %s430_s9 = sshll.u32 (!%p142_p9), %s581_s16, 8 }
  0x10   : > { %s661_s8 = scalar_lea.vmem (!%p142_p9), [#allocation2], %s630_s7  ;;  %s352_s16 = scalar_lea.hbm (!%p142_p9), %s797_s3, %s430_s9 }
  0x11   : > { %s353_s17 = sshll.u32 (!%p142_p9), %s661_s8, 4  ;;  %s355_s19 = sshll.u32 (!%p142_p9), %s352_s16, 4  ;;  %s354_s17 = int_to_ptr.vmem [resolvable:$true] %s353_s17  ;;  %s356_s19 = int_to_ptr.hbm [resolvable:$true] %s355_s19 }
  0x12   : > { %s341_s20 = scalar_lea.sflag (!%p142_p9), [#allocation3], %s162_s27  ;;  %s494_s29 = scalar_lea.hbm (!%p142_p9), %s797_s3, 512 }
  0x13   : > { %s805_s24 = smov (!%p166_p10, %s423_s24), 63  ;;  %v612_v0 = vld [vmem:[%s795_s1] ss:$0 sm:$0xff] }
  0x14   : > { %s424_s28 = sshll.u32 %s805_s24, 3  ;;  %v623_v1 = vld [vmem:[%s796_s2] ss:$0 sm:$0xff]  ;;  %s488_s24 = sshra.s32 %s356_s19, 4  ;;  %s489_s24 = int_to_ptr.hbm [resolvable:$true] %s488_s24 }
  0x15   : > { %s618_s4 = scalar_lea.vmem %s794_s0, %s424_s28  ;;  %s490_s25 = scalar_lea.hbm %s489_s24, 256 }
  0x16   : > { %v172_v2 = vld [vmem:[%s618_s4] sm:$0xff]  ;;  %v173_v3 = vld [vmem:[%s618_s4 + $0x8] sm:$0xff]  ;;  %v174_v4 = vld [vmem:[%s618_s4 + $0x10] sm:$0xff]  ;;  %p491_p11 = scmp.ne.s32.totalorder %s489_s24, %s490_s25  ;;  %p495_p0 = scmp.lt.s32.totalorder %s489_s24, %s797_s3 }
  0x17   : > { %v208_v5 = vmul.f32 %v612_v0, %v172_v2  ;;  %v209_v6 = vmul.f32 %v612_v0, %v173_v3  ;;  %v210_v7 = vmul.f32 %v612_v0, %v174_v4  ;;  %v175_v8 = vld [vmem:[%s618_s4 + $0x18] sm:$0xff]  ;;  %v176_v9 = vld [vmem:[%s618_s4 + $0x20] sm:$0xff]  ;;  %v177_v10 = vld [vmem:[%s618_s4 + $0x28] sm:$0xff]  ;;  %p496_p1 = scmp.lt.s32.totalorder %s494_s29, %s490_s25 }
  0x18   : > { %v211_v11 = vmul.f32 %v612_v0, %v175_v8  ;;  %v212_v12 = vmul.f32 %v612_v0, %v176_v9  ;;  %v213_v13 = vmul.f32 %v612_v0, %v177_v10  ;;  %v178_v14 = vld [vmem:[%s618_s4 + $0x30] sm:$0xff]  ;;  %v179_v15 = vld [vmem:[%s618_s4 + $0x38] sm:$0xff]  ;;  %v180_v24 = vld [vmem:[%s618_s4 + $0x40] sm:$0xff]  ;;  %p492_p12 = pnand %p491_p11, %p598_p5 }
  0x19   : > { %v244_v16 = vadd.f32 %v623_v1, %v208_v5  ;;  %v245_v17 = vadd.f32 %v623_v1, %v209_v6  ;;  %v246_v18 = vadd.f32 %v623_v1, %v210_v7  ;;  %v214_v19 = vmul.f32 %v612_v0, %v178_v14  ;;  %v181_v25 = vld [vmem:[%s618_s4 + $0x48] sm:$0xff]  ;;  %v182_v26 = vld [vmem:[%s618_s4 + $0x50] sm:$0xff]  ;;  %v183_v31 = vld [vmem:[%s618_s4 + $0x58] sm:$0xff]  ;;  %p497_p2 = por %p496_p1, %p495_p0 }
  0x1a   : > { %v247_v20 = vadd.f32 %v623_v1, %v211_v11  ;;  %v248_v21 = vadd.f32 %v623_v1, %v212_v12  ;;  %v249_v22 = vadd.f32 %v623_v1, %v213_v13  ;;  %v215_v23 = vmul.f32 %v612_v0, %v179_v15  ;;  %v184_v32 = vld [vmem:[%s618_s4 + $0x60] sm:$0xff]  ;;  %v185_v33 = vld [vmem:[%s618_s4 + $0x68] sm:$0xff]  ;;  %v186_v37 = vld [vmem:[%s618_s4 + $0x70] sm:$0xff]  ;;  %p493_p13 = pneg %p492_p12 }
  0x1b   : > { %v276_v27 = vmax.f32 %v244_v16, 0.0  ;;  %v277_v28 = vmax.f32 %v245_v17, 0.0  ;;  %v278_v29 = vmax.f32 %v246_v18, 0.0  ;;  %v250_v30 = vadd.f32 %v623_v1, %v214_v19  ;;  %v187_v42 = vld [vmem:[%s618_s4 + $0x78] sm:$0xff]  ;;  %v188_v54 = vld [vmem:[%s618_s4 + $0x80] sm:$0xff]  ;;  %v189_v55 = vld [vmem:[%s618_s4 + $0x88] sm:$0xff] }
  0x1c   : > { %v279_v34 = vmax.f32 %v247_v20, 0.0  ;;  %v280_v35 = vmax.f32 %v248_v21, 0.0  ;;  %v251_v36 = vadd.f32 %v623_v1, %v215_v23  ;;  %v281_v38 = vmax.f32 %v249_v22, 0.0  ;;  %v190_v56 = vld [vmem:[%s618_s4 + $0x90] sm:$0xff]  ;;  %v191_v59 = vld [vmem:[%s618_s4 + $0x98] sm:$0xff]  ;;  %v192_v63 = vld [vmem:[%s618_s4 + $0xa0] sm:$0xff]  ;;  %p498_p3 = pnand %p497_p2, %p493_p13 }
  0x1d   : > { %308 = vst [vmem:[%s661_s8] sm:$0xff] %v276_v27  ;;  %v216_v39 = vmul.f32 %v612_v0, %v180_v24  ;;  %v217_v40 = vmul.f32 %v612_v0, %v181_v25  ;;  %v218_v41 = vmul.f32 %v612_v0, %v182_v26  ;;  %v282_v43 = vmax.f32 %v250_v30, 0.0  ;;  %v193_v6 = vld [vmem:[%s618_s4 + $0xa8] sm:$0xff]  ;;  %v194_v10 = vld [vmem:[%s618_s4 + $0xb0] sm:$0xff]  ;;  %v195_v14 = vld [vmem:[%s618_s4 + $0xb8] sm:$0xff] }
  0x1e   : > { %309 = vst [vmem:[%s661_s8 + $0x8] sm:$0xff] %v277_v28  ;;  %v219_v44 = vmul.f32 %v612_v0, %v183_v31  ;;  %v220_v45 = vmul.f32 %v612_v0, %v184_v32  ;;  %v221_v46 = vmul.f32 %v612_v0, %v185_v33  ;;  %v222_v50 = vmul.f32 %v612_v0, %v186_v37  ;;  %v196_v18 = vld [vmem:[%s618_s4 + $0xc0] sm:$0xff]  ;;  %v197_v22 = vld [vmem:[%s618_s4 + $0xc8] sm:$0xff]  ;;  %v198_v26 = vld [vmem:[%s618_s4 + $0xd0] sm:$0xff] }
  0x1f   : > { %310 = vst [vmem:[%s661_s8 + $0x10] sm:$0xff] %v278_v29  ;;  %v252_v47 = vadd.f32 %v623_v1, %v216_v39  ;;  %v253_v48 = vadd.f32 %v623_v1, %v217_v40  ;;  %v254_v49 = vadd.f32 %v623_v1, %v218_v41  ;;  %v283_v51 = vmax.f32 %v251_v36, 0.0  ;;  %v199_v30 = vld [vmem:[%s618_s4 + $0xd8] sm:$0xff] }
  0x20   : > { %311 = vst [vmem:[%s661_s8 + $0x18] sm:$0xff] %v279_v34  ;;  %v255_v52 = vadd.f32 %v623_v1, %v219_v44  ;;  %v223_v53 = vmul.f32 %v612_v0, %v187_v42  ;;  %v256_v58 = vadd.f32 %v623_v1, %v220_v45  ;;  %v257_v62 = vadd.f32 %v623_v1, %v221_v46  ;;  %v200_v34 = vld [vmem:[%s618_s4 + $0xe0] sm:$0xff]  ;;  %v202_v42 = vld [vmem:[%s618_s4 + $0xf0] sm:$0xff]  ;;  %v203_v46 = vld [vmem:[%s618_s4 + $0xf8] sm:$0xff] }
  0x21   : > { %312 = vst [vmem:[%s661_s8 + $0x20] sm:$0xff] %v280_v35  ;;  %v284_v57 = vmax.f32 %v252_v47, 0.0  ;;  %v285_v60 = vmax.f32 %v253_v48, 0.0  ;;  %v286_v61 = vmax.f32 %v254_v49, 0.0  ;;  %v258_v2 = vadd.f32 %v623_v1, %v222_v50 }
  0x22   : > { %313 = vst [vmem:[%s661_s8 + $0x28] sm:$0xff] %v281_v38  ;;  %v224_v3 = vmul.f32 %v612_v0, %v188_v54  ;;  %v225_v4 = vmul.f32 %v612_v0, %v189_v55  ;;  %v226_v5 = vmul.f32 %v612_v0, %v190_v56  ;;  %v287_v7 = vmax.f32 %v255_v52, 0.0  ;;  %v201_v38 = vld [vmem:[%s618_s4 + $0xe8] sm:$0xff] }
  0x23   : > { %314 = vst [vmem:[%s661_s8 + $0x30] sm:$0xff] %v282_v43  ;;  %v259_v8 = vadd.f32 %v623_v1, %v223_v53  ;;  %v227_v9 = vmul.f32 %v612_v0, %v191_v59  ;;  %v288_v11 = vmax.f32 %v256_v58, 0.0  ;;  %v228_v13 = vmul.f32 %v612_v0, %v192_v63 }
  0x24   : > { %315 = vst [vmem:[%s661_s8 + $0x38] sm:$0xff] %v283_v51  ;;  %v260_v12 = vadd.f32 %v623_v1, %v224_v3  ;;  %v289_v15 = vmax.f32 %v257_v62, 0.0  ;;  %v261_v16 = vadd.f32 %v623_v1, %v225_v4  ;;  %v229_v17 = vmul.f32 %v612_v0, %v193_v6 }
  0x25   : > { %316 = vst [vmem:[%s661_s8 + $0x40] sm:$0xff] %v284_v57  ;;  %v290_v19 = vmax.f32 %v258_v2, 0.0  ;;  %v262_v20 = vadd.f32 %v623_v1, %v226_v5  ;;  %v230_v21 = vmul.f32 %v612_v0, %v194_v10  ;;  %v291_v23 = vmax.f32 %v259_v8, 0.0 }
  0x26   : > { %317 = vst [vmem:[%s661_s8 + $0x48] sm:$0xff] %v285_v60  ;;  %v263_v24 = vadd.f32 %v623_v1, %v227_v9  ;;  %v231_v25 = vmul.f32 %v612_v0, %v195_v14  ;;  %v292_v27 = vmax.f32 %v260_v12, 0.0  ;;  %v264_v28 = vadd.f32 %v623_v1, %v228_v13 }
  0x27   : > { %318 = vst [vmem:[%s661_s8 + $0x50] sm:$0xff] %v286_v61  ;;  %v232_v29 = vmul.f32 %v612_v0, %v196_v18  ;;  %v293_v31 = vmax.f32 %v261_v16, 0.0  ;;  %v265_v32 = vadd.f32 %v623_v1, %v229_v17  ;;  %v233_v33 = vmul.f32 %v612_v0, %v197_v22 }
  0x28   : > { %319 = vst [vmem:[%s661_s8 + $0x58] sm:$0xff] %v287_v7  ;;  %v294_v35 = vmax.f32 %v262_v20, 0.0  ;;  %v266_v36 = vadd.f32 %v623_v1, %v230_v21  ;;  %v234_v37 = vmul.f32 %v612_v0, %v198_v26  ;;  %v295_v39 = vmax.f32 %v263_v24, 0.0 }
  0x29   : > { %320 = vst [vmem:[%s661_s8 + $0x60] sm:$0xff] %v288_v11  ;;  %v267_v40 = vadd.f32 %v623_v1, %v231_v25  ;;  %v235_v41 = vmul.f32 %v612_v0, %v199_v30  ;;  %v296_v43 = vmax.f32 %v264_v28, 0.0  ;;  %v268_v44 = vadd.f32 %v623_v1, %v232_v29 }
  0x2a   : > { %321 = vst [vmem:[%s661_s8 + $0x68] sm:$0xff] %v289_v15  ;;  %v236_v45 = vmul.f32 %v612_v0, %v200_v34  ;;  %v297_v47 = vmax.f32 %v265_v32, 0.0  ;;  %v269_v48 = vadd.f32 %v623_v1, %v233_v33  ;;  %v237_v49 = vmul.f32 %v612_v0, %v201_v38 }
  0x2b   : > { %322 = vst [vmem:[%s661_s8 + $0x70] sm:$0xff] %v290_v19  ;;  %v298_v50 = vmax.f32 %v266_v36, 0.0  ;;  %v270_v51 = vadd.f32 %v623_v1, %v234_v37  ;;  %v238_v52 = vmul.f32 %v612_v0, %v202_v42  ;;  %v299_v53 = vmax.f32 %v267_v40, 0.0 }
  0x2c   : > { %323 = vst [vmem:[%s661_s8 + $0x78] sm:$0xff] %v291_v23  ;;  %v271_v54 = vadd.f32 %v623_v1, %v235_v41  ;;  %v239_v55 = vmul.f32 %v612_v0, %v203_v46  ;;  %v300_v56 = vmax.f32 %v268_v44, 0.0  ;;  %v272_v57 = vadd.f32 %v623_v1, %v236_v45 }
  0x2d   : > { %324 = vst [vmem:[%s661_s8 + $0x80] sm:$0xff] %v292_v27  ;;  %v301_v58 = vmax.f32 %v269_v48, 0.0  ;;  %v273_v59 = vadd.f32 %v623_v1, %v237_v49  ;;  %v302_v60 = vmax.f32 %v270_v51, 0.0  ;;  %v274_v61 = vadd.f32 %v623_v1, %v238_v52 }
  0x2e   : > { %325 = vst [vmem:[%s661_s8 + $0x88] sm:$0xff] %v293_v31  ;;  %v303_v0 = vmax.f32 %v271_v54, 0.0  ;;  %v275_v62 = vadd.f32 %v623_v1, %v239_v55  ;;  %v304_v63 = vmax.f32 %v272_v57, 0.0 }
  0x2f   : > { %326 = vst [vmem:[%s661_s8 + $0x90] sm:$0xff] %v294_v35  ;;  %v305_v2 = vmax.f32 %v273_v59, 0.0  ;;  %v306_v3 = vmax.f32 %v274_v61, 0.0 }
  0x30   : > { %327 = vst [vmem:[%s661_s8 + $0x98] sm:$0xff] %v295_v39  ;;  %v307_v4 = vmax.f32 %v275_v62, 0.0 }
  0x31   : > { %328 = vst [vmem:[%s661_s8 + $0xa0] sm:$0xff] %v296_v43 }
  0x32   : > { %329 = vst [vmem:[%s661_s8 + $0xa8] sm:$0xff] %v297_v47 }
  0x33   : > { %330 = vst [vmem:[%s661_s8 + $0xb0] sm:$0xff] %v298_v50 }
  0x34   : > { %331 = vst [vmem:[%s661_s8 + $0xb8] sm:$0xff] %v299_v53 }
  0x35   : > { %332 = vst [vmem:[%s661_s8 + $0xc0] sm:$0xff] %v300_v56 }
  0x36   : > { %333 = vst [vmem:[%s661_s8 + $0xc8] sm:$0xff] %v301_v58 }
  0x37   : > { %334 = vst [vmem:[%s661_s8 + $0xd0] sm:$0xff] %v302_v60 }
  0x38   : > { %335 = vst [vmem:[%s661_s8 + $0xd8] sm:$0xff] %v303_v0 }
  0x39   : > { %336 = vst [vmem:[%s661_s8 + $0xe0] sm:$0xff] %v304_v63 }
  0x3a   : > { %337 = vst [vmem:[%s661_s8 + $0xe8] sm:$0xff] %v305_v2 }
  0x3b   : > { %338 = vst [vmem:[%s661_s8 + $0xf0] sm:$0xff] %v306_v3 }
  0x3c   : > { %339 = vst [vmem:[%s661_s8 + $0xf8] sm:$0xff] %v307_v4 }
  0x3d   : > { %501 = shalt.err (!%p498_p3)
}
  0x3e   : > { %s538_s27 = smov 128   ;;  %s539_s5 = smov 8  }
  0x3f   : > { %431 = dma.vmem_to_hbm [thread:$0]  (%p598_p5), %s354_s17, 4096, %s356_s19, %s341_s20, %s538_s27, %s538_s27, %s539_s5  }
  0x40 PF: > { %p437_p4 = scmp.ge.s32.totalorder %s536_s15, 2  ;;  %s370_s6 = sand.u32 1, %s524_s12  }
  0x41   : > { %s371_s7 = scalar_lea.sflag [#allocation3], %s370_s6 }
  0x42   : > { %p434_p7 = pnand %p437_p4, %p602_p6 }
  0x44   : > { %p435_p8 = pneg %p434_p7 }
  0x46   : > { %519 = dma.done.wait (%p435_p8), %s371_s7, 4096  }
  0x47   : > { %521 = vsyncadd (%p435_p8), %s371_s7, 4294963200  ;;  %p13_p9 = scmp.ge.s32.totalorder %s585_s18, 4   ;;  %s800_s12 = smov %s528_s13 }
  0x48   : > { %s801_s13 = smov %s532_s14  ;;  %s802_s14 = smov %s596_s21 }
  0x49   : > { %s803_s15 = smov %s585_s18  ;;  %15 = sbr.rel (!%p13_p9) target bundleno = 3 (0x3), region = 67 }
  0x4e   :  { %377 = vsyncpa [#allocation3], 1 }
  0x4f   :  { %379 = vsyncpa [#allocation3 + $0x1], 1 }

// kernel: apply_node_func.3
= control target key start
LH: loop header
LB: loop body
LE: loop exit
PB: predicated region body
PF: predicated region fallthrough
CT: control target
= control target key end

     0   :  { %s1476_s18 = smov 0   ;;  %s2203_s0 = inlined_call_operand.vmem [shape: bf16[512,128], index: 0, kind: input, shape index: {}]   ;;  %s2204_s1 = inlined_call_operand.vmem [shape: bf16[128,256], index: 1, kind: input, shape index: {}]   ;;  %s2205_s2 = inlined_call_operand.vmem [shape: f32[1,256], index: 2, kind: input, shape index: {}]   ;;  %s2206_s3 = inlined_call_operand.vmem [shape: f32[512,256], index: 3, kind: output, shape index: {0}]   ;;  %s2207_s4 = inlined_call_operand.vmem [shape: f32[1,256], index: 4, kind: output, shape index: {1}]   ;;  %s2208_s5 = inlined_call_operand.vmem [shape: f32[1,256], index: 5, kind: output, shape index: {2}]  }
   0x1 LB: > { %s1482_s19 = sadd.s32 4294967295, %s1443_s18   ;;  %p1241_p0 = scmp.ge.s32.totalorder %s1443_s18, 1  ;;  %s1443_s18 = sphi %s1476_s18, %s16_s18  }
   0x2   : > { %p183_p1 = scmp.lt.s32.totalorder %s1443_s18, 3 }
   0x4   : > { %p184_p2 = pnand %p1241_p0, %p183_p1 }
   0x6   : > { %187 = sbr.rel (%p184_p2) target bundleno = 361 (0x169), region = 32 }
   0xb   : > { %s1242_s20 = sshll.u32 %s1482_s19, 5  ;;  %p1247_p4 = scmp.ne.s32.totalorder %s1482_s19, 0 }
   0xc   : > { %p213_p3 = scmp.lt.s32.totalorder %s1242_s20, 63 }
   0xd   : > { %228 = sbr.rel (%p1247_p4) target bundleno = 23 (0x17), region = 36 }
   0xe   : > { %s2251_s20 = smov (!%p213_p3, %s1242_s20), 63 }
   0xf   : > { %s1243_s21 = sshll.u32 %s2251_s20, 2  ;;  %s1379_s22 = sshll.u32 %s2251_s20, 4 }
  0x10   : > { %s1490_s25 = scalar_lea.vmem %s2203_s0, %s1243_s21  ;;  %s1495_s28 = scalar_lea.vmem %s2206_s3, %s1379_s22 }
  0x12   : > { %v229_v0 = vlaneseq  ;;  %v1445_v1 = vmov 0.0  }
  0x14   : > { %vm231_vm0 = vcmp.lt.s32.totalorder %v229_v0, 256 }
  0x15   : > { %233 = vst.msk [vmem:[%s2207_s4] sm:$0x3] %vm231_vm0, %v1445_v1 }
  0x16   : > { %234 = vst.msk [vmem:[%s2208_s5] sm:$0x3] %vm231_vm0, %v1445_v1 }
  0x17 PF: > { %v1370_v2 = vld [vmem:[%s2204_s1 + $0x70] sm:$0xf]  ;;  %v1411_v3 = vld [vmem:[%s2204_s1 + $0x74] sm:$0xf0]  ;;  %v1410_v4 = vld [vmem:[%s2204_s1 + $0x74] sm:$0xf] }
  0x18   : > { %v1371_v5 = vor.u32 %v1411_v3, %v1370_v2  ;;  %v1372_v6 = vld [vmem:[%s2204_s1 + $0x78] sm:$0xf0]  ;;  %v1362_v7 = vld [vmem:[%s2204_s1 + $0x60] sm:$0xf]  ;;  %v1409_v8 = vld [vmem:[%s2204_s1 + $0x64] sm:$0xf0]  ;;  %v2209_v2 = vlaneseq }
  0x19   : > { %v1375_v9 = vor.u32 %v1410_v4, %v1372_v6  ;;  %v1408_v10 = vld [vmem:[%s2204_s1 + $0x64] sm:$0xf]  ;;  %v1364_v11 = vld [vmem:[%s2204_s1 + $0x68] sm:$0xf0]  ;;  %v1363_v12 = vor.u32 %v1409_v8, %v1362_v7  ;;  %v1354_v14 = vld [vmem:[%s2204_s1 + $0x50] sm:$0xf] }
  0x1a   : > { %465 = vmatpush.bf16.msra.mxu0 %v1371_v5  ;;  %1412 = vmatpush.bf16.msra.mxu2 %v1371_v5  ;;  %v1367_v13 = vor.u32 %v1408_v10, %v1364_v11  ;;  %v1407_v15 = vld [vmem:[%s2204_s1 + $0x54] sm:$0xf0]  ;;  %v1406_v16 = vld [vmem:[%s2204_s1 + $0x54] sm:$0xf]  ;;  %v1356_v17 = vld [vmem:[%s2204_s1 + $0x58] sm:$0xf0] }
  0x1b   : > { %554 = vmatpush.bf16.msra.mxu1 %v1375_v9  ;;  %1420 = vmatpush.bf16.msra.mxu3 %v1375_v9  ;;  %v1355_v18 = vor.u32 %v1407_v15, %v1354_v14  ;;  %v1359_v19 = vor.u32 %v1406_v16, %v1356_v17  ;;  %v1346_v20 = vld [vmem:[%s2204_s1 + $0x40] sm:$0xf]  ;;  %v1405_v21 = vld [vmem:[%s2204_s1 + $0x44] sm:$0xf0]  ;;  %v1404_v22 = vld [vmem:[%s2204_s1 + $0x44] sm:$0xf] }
  0x1c   : > { %v1348_v23 = vld [vmem:[%s2204_s1 + $0x48] sm:$0xf0]  ;;  %v1347_v24 = vor.u32 %v1405_v21, %v1346_v20  ;;  %v1338_v26 = vld [vmem:[%s2204_s1 + $0x30] sm:$0xf]  ;;  %v1403_v27 = vld [vmem:[%s2204_s1 + $0x34] sm:$0xf0] }
  0x1d   : > { %v1351_v25 = vor.u32 %v1404_v22, %v1348_v23  ;;  %v1402_v28 = vld [vmem:[%s2204_s1 + $0x34] sm:$0xf]  ;;  %v1340_v29 = vld [vmem:[%s2204_s1 + $0x38] sm:$0xf0]  ;;  %v1339_v30 = vor.u32 %v1403_v27, %v1338_v26  ;;  %v1330_v32 = vld [vmem:[%s2204_s1 + $0x20] sm:$0xf] }
  0x1e   : > { %466 = vmatpush.bf16.msra.mxu0 %v1363_v12  ;;  %1413 = vmatpush.bf16.msra.mxu2 %v1363_v12  ;;  %v1343_v31 = vor.u32 %v1402_v28, %v1340_v29  ;;  %v1401_v33 = vld [vmem:[%s2204_s1 + $0x24] sm:$0xf0]  ;;  %v1400_v34 = vld [vmem:[%s2204_s1 + $0x24] sm:$0xf]  ;;  %v1332_v35 = vld [vmem:[%s2204_s1 + $0x28] sm:$0xf0] }
  0x1f   : > { %555 = vmatpush.bf16.msra.mxu1 %v1367_v13  ;;  %1421 = vmatpush.bf16.msra.mxu3 %v1367_v13  ;;  %v1331_v36 = vor.u32 %v1401_v33, %v1330_v32  ;;  %v1335_v37 = vor.u32 %v1400_v34, %v1332_v35  ;;  %v1322_v38 = vld [vmem:[%s2204_s1 + $0x10] sm:$0xf]  ;;  %v1399_v39 = vld [vmem:[%s2204_s1 + $0x14] sm:$0xf0]  ;;  %v1398_v40 = vld [vmem:[%s2204_s1 + $0x14] sm:$0xf] }
  0x20   : > { %v1324_v41 = vld [vmem:[%s2204_s1 + $0x18] sm:$0xf0]  ;;  %v1323_v42 = vor.u32 %v1399_v39, %v1322_v38  ;;  %v1314_v44 = vld [vmem:[%s2204_s1] sm:$0xf]  ;;  %v1397_v45 = vld [vmem:[%s2204_s1 + $0x4] sm:$0xf0] }
  0x21   : > { %v1327_v43 = vor.u32 %v1398_v40, %v1324_v41  ;;  %v1396_v46 = vld [vmem:[%s2204_s1 + $0x4] sm:$0xf]  ;;  %v1316_v47 = vld [vmem:[%s2204_s1 + $0x8] sm:$0xf0]  ;;  %v1315_v48 = vor.u32 %v1397_v45, %v1314_v44  ;;  %v1382_v54 = vld [vmem:[%s1490_s25 + $0x10] sm:$0xff]  ;;  %s1376_s11 = sshll.u32 %s1482_s19, 8 }
  0x22   : > { %467 = vmatpush.bf16.msra.mxu0 %v1355_v18  ;;  %1414 = vmatpush.bf16.msra.mxu2 %v1355_v18  ;;  %v1319_v49 = vor.u32 %v1396_v46, %v1316_v47  ;;  %v1380_v50 = vld [vmem:[%s1490_s25] sm:$0xff]  ;;  %v1381_v52 = vld [vmem:[%s1490_s25 + $0x8] sm:$0xff]  ;;  %v1390_v55 = vld [vmem:[%s1490_s25 + $0x50] sm:$0xff]  ;;  %v1623_v5 = vshrl.u32 %v2209_v2, 7  ;;  %v1627_v8 = vstv %s1376_s11 }
  0x23   : > { %556 = vmatpush.bf16.msra.mxu1 %v1359_v19  ;;  %1422 = vmatpush.bf16.msra.mxu3 %v1359_v19  ;;  %v1388_v51 = vld [vmem:[%s1490_s25 + $0x40] sm:$0xff]  ;;  %v1389_v53 = vld [vmem:[%s1490_s25 + $0x48] sm:$0xff]  ;;  %v1383_v56 = vld [vmem:[%s1490_s25 + $0x18] sm:$0xff] }
  0x24   : > { %v1391_v57 = vld [vmem:[%s1490_s25 + $0x58] sm:$0xff]  ;;  %v1384_v58 = vld [vmem:[%s1490_s25 + $0x20] sm:$0xff]  ;;  %v1385_v60 = vld [vmem:[%s1490_s25 + $0x28] sm:$0xff]  ;;  %v710_v9 = vadd.s32 8, %v1623_v5  ;;  %v742_v13 = vadd.s32 %v1627_v8, %v1623_v5  ;;  %v711_v16 = vadd.s32 16, %v1623_v5  ;;  %v712_v41 = vadd.s32 24, %v1623_v5 }
  0x25   : > { %v1392_v59 = vld [vmem:[%s1490_s25 + $0x60] sm:$0xff]  ;;  %v1393_v61 = vld [vmem:[%s1490_s25 + $0x68] sm:$0xff]  ;;  %v1386_v62 = vld [vmem:[%s1490_s25 + $0x30] sm:$0xff]  ;;  %v732_v2 = vadd.s32 184, %v1623_v5 }
  0x26   : > { %468 = vmatpush.bf16.msra.mxu0 %v1347_v24  ;;  %1415 = vmatpush.bf16.msra.mxu2 %v1347_v24  ;;  %v1394_v63 = vld [vmem:[%s1490_s25 + $0x70] sm:$0xff]  ;;  %v1387_v0 = vld [vmem:[%s1490_s25 + $0x38] sm:$0xff]  ;;  %v283_v3 = vld [vmem:[%s2205_s2] sm:$0x3]  ;;  %v743_v14 = vadd.s32 %v1627_v8, %v710_v9  ;;  %vm774_vm1 = vcmp.lt.s32.totalorder %v742_v13, 512  ;;  %v744_v27 = vadd.s32 %v1627_v8, %v711_v16 }
  0x27   : > { %557 = vmatpush.bf16.msra.mxu1 %v1351_v25  ;;  %1423 = vmatpush.bf16.msra.mxu3 %v1351_v25  ;;  %v1395_v1 = vld [vmem:[%s1490_s25 + $0x78] sm:$0xff]  ;;  %v1619_v4 = vperm.slane %v283_v3, 0  ;;  %v1625_v6 = vperm.slane %v283_v3, 1 }
  0x28   : > { %vm775_vm2 = vcmp.lt.s32.totalorder %v743_v14, 512  ;;  %vm776_vm3 = vcmp.lt.s32.totalorder %v744_v27, 512 }
  0x2a   : > { %469 = vmatpush.bf16.msra.mxu0 %v1339_v30  ;;  %1416 = vmatpush.bf16.msra.mxu2 %v1339_v30 }
  0x2b   : > { %558 = vmatpush.bf16.msra.mxu1 %v1343_v31  ;;  %1424 = vmatpush.bf16.msra.mxu3 %v1343_v31 }
  0x2e   : > { %470 = vmatpush.bf16.msra.mxu0 %v1331_v36  ;;  %1417 = vmatpush.bf16.msra.mxu2 %v1331_v36 }
  0x2f   : > { %559 = vmatpush.bf16.msra.mxu1 %v1335_v37  ;;  %1425 = vmatpush.bf16.msra.mxu3 %v1335_v37 }
  0x32   : > { %471 = vmatpush.bf16.msra.mxu0 %v1323_v42  ;;  %1418 = vmatpush.bf16.msra.mxu2 %v1323_v42 }
  0x33   : > { %560 = vmatpush.bf16.msra.mxu1 %v1327_v43  ;;  %1426 = vmatpush.bf16.msra.mxu3 %v1327_v43 }
  0x36   : > { %472 = vmatpush.bf16.msra.mxu0 %v1315_v48  ;;  %1419 = vmatpush.bf16.msra.mxu2 %v1315_v48 }
  0x37   : > { %561 = vmatpush.bf16.msra.mxu1 %v1319_v49  ;;  %1427 = vmatpush.bf16.msra.mxu3 %v1319_v49 }
  0x39   : > { %473 = vmatmul.bf16.vlgmr.msra.gmra.mxu0 %v1380_v50  ;;  %513 = vmatmul.bf16.vlgmr.msra.gmra.mxu2 %v1388_v51 }
  0x3a   : > { %562 = vmatmul.bf16.vlgmr.msra.gmra.mxu1 %v1380_v50  ;;  %602 = vmatmul.bf16.vlgmr.msra.gmra.mxu3 %v1388_v51  ;;  %v745_v50 = vadd.s32 %v1627_v8, %v712_v41 }
  0x3c   : > { %vm777_vm4 = vcmp.lt.s32.totalorder %v745_v50, 512 }
  0x49   : > { %478 = vmatmul.bf16.gmra.mxu0 %v1381_v52  ;;  %518 = vmatmul.bf16.gmra.mxu2 %v1389_v53 }
  0x4a   : > { %567 = vmatmul.bf16.gmra.mxu1 %v1381_v52  ;;  %607 = vmatmul.bf16.gmra.mxu3 %v1389_v53 }
  0x59   : > { %483 = vmatmul.bf16.gmra.mxu0 %v1382_v54  ;;  %523 = vmatmul.bf16.gmra.mxu2 %v1390_v55 }
  0x5a   : > { %572 = vmatmul.bf16.gmra.mxu1 %v1382_v54  ;;  %612 = vmatmul.bf16.gmra.mxu3 %v1390_v55 }
  0x69   : > { %488 = vmatmul.bf16.gmra.mxu0 %v1383_v56  ;;  %528 = vmatmul.bf16.gmra.mxu2 %v1391_v57 }
  0x6a   : > { %577 = vmatmul.bf16.gmra.mxu1 %v1383_v56  ;;  %617 = vmatmul.bf16.gmra.mxu3 %v1391_v57 }
  0x79   : > { %493 = vmatmul.bf16.gmra.mxu0 %v1384_v58  ;;  %533 = vmatmul.bf16.gmra.mxu2 %v1392_v59 }
  0x7a   : > { %582 = vmatmul.bf16.gmra.mxu1 %v1384_v58  ;;  %622 = vmatmul.bf16.gmra.mxu3 %v1392_v59  ;;  %v713_v59 = vadd.s32 32, %v1623_v5 }
  0x7c   : > { %v746_v9 = vadd.s32 %v1627_v8, %v713_v59 }
  0x7e   : > { %vm778_vm5 = vcmp.lt.s32.totalorder %v746_v9, 512 }
  0x89   : > { %498 = vmatmul.bf16.gmra.mxu0 %v1385_v60  ;;  %538 = vmatmul.bf16.gmra.mxu2 %v1393_v61 }
  0x8a   : > { %587 = vmatmul.bf16.gmra.mxu1 %v1385_v60  ;;  %627 = vmatmul.bf16.gmra.mxu3 %v1393_v61 }
  0x99   : > { %503 = vmatmul.bf16.gmra.mxu0 %v1386_v62  ;;  %543 = vmatmul.bf16.gmra.mxu2 %v1394_v63 }
  0x9a   : > { %592 = vmatmul.bf16.gmra.mxu1 %v1386_v62  ;;  %632 = vmatmul.bf16.gmra.mxu3 %v1394_v63 }
  0xa9   : > { %508 = vmatmul.bf16.gmra.mxu0 %v1387_v0  ;;  %548 = vmatmul.bf16.gmra.mxu2 %v1395_v1 }
  0xaa   : > { %597 = vmatmul.bf16.gmra.mxu1 %v1387_v0  ;;  %637 = vmatmul.bf16.gmra.mxu3 %v1395_v1 }
  0xb6   : > { %v474_v7 = vpop.f32.mrf.mxu0 }
  0xb7   : > { %v475_v10 = vadd.f32 %v474_v7, %v1619_v4  ;;  %v563_v11 = vpop.f32.mrf.mxu1 }
  0xb8   : > { %v564_v12 = vadd.f32 %v563_v11, %v1625_v6 }
  0xb9   : > { %643 = vst [vmem:[%s1495_s28] sm:$0xff] %v475_v10  ;;  %v870_v21 = vsel %vm774_vm1, %v475_v10, 0.0 }
  0xba   : > { %644 = vst [vmem:[%s1495_s28 + $0x8] sm:$0xff] %v564_v12  ;;  %v871_v24 = vsel %vm774_vm1, %v564_v12, 0.0  ;;  %v1022_v28 = vmul.f32 %v870_v21, %v870_v21 }
  0xbb   : > { %v1023_v32 = vmul.f32 %v871_v24, %v871_v24 }
  0xbc   : > { %v514_v15 = vpop.f32.mrf.mxu2 }
  0xbd   : > { %v603_v17 = vpop.f32.mrf.mxu3  ;;  %v1639_v18 = vadd.f32 %v514_v15, %v1619_v4 }
  0xbe   : > { %v476_v19 = vpop.f32.mrf.mxu0  ;;  %v1642_v20 = vadd.f32 %v603_v17, %v1625_v6 }
  0xbf   : > { %v477_v22 = vadd.f32 %v476_v19, %v1619_v4  ;;  %v565_v23 = vpop.f32.mrf.mxu1  ;;  %675 = vst [vmem:[%s1495_s28 + $0x100] sm:$0xff] %v1639_v18  ;;  %v714_v19 = vadd.s32 40, %v1623_v5 }
  0xc0   : > { %v566_v25 = vadd.f32 %v565_v23, %v1625_v6  ;;  %676 = vst [vmem:[%s1495_s28 + $0x108] sm:$0xff] %v1642_v20 }
  0xc1   : > { %645 = vst [vmem:[%s1495_s28 + $0x10] sm:$0xff] %v477_v22  ;;  %v872_v26 = vsel %vm775_vm2, %v477_v22, 0.0 }
  0xc2   : > { %v935_v29 = vadd.f32 %v872_v26, %v870_v21  ;;  %v1024_v30 = vmul.f32 %v872_v26, %v872_v26  ;;  %646 = vst [vmem:[%s1495_s28 + $0x18] sm:$0xff] %v566_v25  ;;  %v873_v31 = vsel %vm775_vm2, %v566_v25, 0.0 }
  0xc3   : > { %v972_v33 = vadd.f32 %v873_v31, %v871_v24  ;;  %v1025_v34 = vmul.f32 %v873_v31, %v873_v31 }
  0xc4   : > { %v1086_v35 = vadd.f32 %v1024_v30, %v1022_v28  ;;  %v516_v36 = vpop.f32.mrf.mxu2 }
  0xc5   : > { %v1123_v37 = vadd.f32 %v1025_v34, %v1023_v32  ;;  %v605_v38 = vpop.f32.mrf.mxu3  ;;  %v1656_v39 = vadd.f32 %v516_v36, %v1619_v4 }
  0xc6   : > { %v479_v40 = vpop.f32.mrf.mxu0  ;;  %v1660_v42 = vadd.f32 %v605_v38, %v1625_v6 }
  0xc7   : > { %v480_v43 = vadd.f32 %v479_v40, %v1619_v4  ;;  %v568_v44 = vpop.f32.mrf.mxu1  ;;  %677 = vst [vmem:[%s1495_s28 + $0x110] sm:$0xff] %v1656_v39 }
  0xc8   : > { %v569_v45 = vadd.f32 %v568_v44, %v1625_v6  ;;  %678 = vst [vmem:[%s1495_s28 + $0x118] sm:$0xff] %v1660_v42 }
  0xc9   : > { %647 = vst [vmem:[%s1495_s28 + $0x20] sm:$0xff] %v480_v43  ;;  %v874_v46 = vsel %vm776_vm3, %v480_v43, 0.0 }
  0xca   : > { %v936_v47 = vadd.f32 %v935_v29, %v874_v46  ;;  %v1026_v48 = vmul.f32 %v874_v46, %v874_v46  ;;  %648 = vst [vmem:[%s1495_s28 + $0x28] sm:$0xff] %v569_v45  ;;  %v875_v49 = vsel %vm776_vm3, %v569_v45, 0.0  ;;  %v1703_v29 = vadd.s32 %v1627_v8, %v714_v19 }
  0xcb   : > { %v973_v51 = vadd.f32 %v972_v33, %v875_v49  ;;  %v1027_v52 = vmul.f32 %v875_v49, %v875_v49 }
  0xcc   : > { %v1087_v53 = vadd.f32 %v1086_v35, %v1026_v48  ;;  %v519_v54 = vpop.f32.mrf.mxu2  ;;  %vm779_vm6 = vcmp.lt.s32.totalorder %v1703_v29, 512  ;;  %v719_v29 = vadd.s32 80, %v1623_v5 }
  0xcd   : > { %v1124_v55 = vadd.f32 %v1123_v37, %v1027_v52  ;;  %v608_v56 = vpop.f32.mrf.mxu3  ;;  %v1672_v57 = vadd.f32 %v519_v54, %v1619_v4 }
  0xce   : > { %v481_v58 = vpop.f32.mrf.mxu0  ;;  %v1676_v60 = vadd.f32 %v608_v56, %v1625_v6 }
  0xcf   : > { %v482_v61 = vadd.f32 %v481_v58, %v1619_v4  ;;  %v570_v62 = vpop.f32.mrf.mxu1  ;;  %679 = vst [vmem:[%s1495_s28 + $0x120] sm:$0xff] %v1672_v57 }
  0xd0   : > { %v571_v63 = vadd.f32 %v570_v62, %v1625_v6  ;;  %680 = vst [vmem:[%s1495_s28 + $0x128] sm:$0xff] %v1676_v60 }
  0xd1   : > { %649 = vst [vmem:[%s1495_s28 + $0x30] sm:$0xff] %v482_v61  ;;  %v876_v0 = vsel %vm777_vm4, %v482_v61, 0.0 }
  0xd2   : > { %v937_v1 = vadd.f32 %v936_v47, %v876_v0  ;;  %v1028_v3 = vmul.f32 %v876_v0, %v876_v0  ;;  %650 = vst [vmem:[%s1495_s28 + $0x38] sm:$0xff] %v571_v63  ;;  %v877_v7 = vsel %vm777_vm4, %v571_v63, 0.0 }
  0xd3   : > { %v974_v10 = vadd.f32 %v973_v51, %v877_v7  ;;  %v1029_v11 = vmul.f32 %v877_v7, %v877_v7 }
  0xd4   : > { %v1088_v12 = vadd.f32 %v1087_v53, %v1028_v3  ;;  %v521_v13 = vpop.f32.mrf.mxu2 }
  0xd5   : > { %v1125_v14 = vadd.f32 %v1124_v55, %v1029_v11  ;;  %v610_v15 = vpop.f32.mrf.mxu3  ;;  %v1688_v16 = vadd.f32 %v521_v13, %v1619_v4 }
  0xd6   : > { %v484_v17 = vpop.f32.mrf.mxu0  ;;  %v1692_v21 = vadd.f32 %v610_v15, %v1625_v6 }
  0xd7   : > { %v485_v22 = vadd.f32 %v484_v17, %v1619_v4  ;;  %v573_v23 = vpop.f32.mrf.mxu1  ;;  %681 = vst [vmem:[%s1495_s28 + $0x130] sm:$0xff] %v1688_v16  ;;  %v725_v17 = vadd.s32 128, %v1623_v5 }
  0xd8   : > { %v574_v24 = vadd.f32 %v573_v23, %v1625_v6  ;;  %682 = vst [vmem:[%s1495_s28 + $0x138] sm:$0xff] %v1692_v21  ;;  %v726_v23 = vadd.s32 136, %v1623_v5 }
  0xd9   : > { %651 = vst [vmem:[%s1495_s28 + $0x40] sm:$0xff] %v485_v22  ;;  %v878_v25 = vsel %vm778_vm5, %v485_v22, 0.0 }
  0xda   : > { %v938_v26 = vadd.f32 %v937_v1, %v878_v25  ;;  %v1030_v27 = vmul.f32 %v878_v25, %v878_v25  ;;  %652 = vst [vmem:[%s1495_s28 + $0x48] sm:$0xff] %v574_v24  ;;  %v879_v28 = vsel %vm778_vm5, %v574_v24, 0.0 }
  0xdb   : > { %v1705_v30 = vadd.f32 %v974_v10, %v879_v28  ;;  %v1031_v31 = vmul.f32 %v879_v28, %v879_v28 }
  0xdc   : > { %v1089_v32 = vadd.f32 %v1088_v12, %v1030_v27  ;;  %v524_v33 = vpop.f32.mrf.mxu2 }
  0xdd   : > { %v1707_v34 = vadd.f32 %v1125_v14, %v1031_v31  ;;  %v613_v35 = vpop.f32.mrf.mxu3  ;;  %v1710_v36 = vadd.f32 %v524_v33, %v1619_v4  ;;  %v758_v31 = vadd.s32 %v1627_v8, %v725_v17  ;;  %v727_v33 = vadd.s32 144, %v1623_v5 }
  0xde   : > { %v486_v37 = vpop.f32.mrf.mxu0  ;;  %v1714_v38 = vadd.f32 %v613_v35, %v1625_v6  ;;  %v715_v35 = vadd.s32 48, %v1623_v5 }
  0xdf   : > { %v487_v40 = vadd.f32 %v486_v37, %v1619_v4  ;;  %v575_v41 = vpop.f32.mrf.mxu1  ;;  %683 = vst [vmem:[%s1495_s28 + $0x140] sm:$0xff] %v1710_v36  ;;  %v728_v37 = vadd.s32 152, %v1623_v5  ;;  %vm790_vm7 = vcmp.lt.s32.totalorder %v758_v31, 512  ;;  %v718_v31 = vadd.s32 72, %v1623_v5 }
  0xe0   : > { %v1720_v43 = vadd.f32 %v575_v41, %v1625_v6  ;;  %684 = vst [vmem:[%s1495_s28 + $0x148] sm:$0xff] %v1714_v38  ;;  %v729_v41 = vadd.s32 160, %v1623_v5 }
  0xe1   : > { %653 = vst [vmem:[%s1495_s28 + $0x50] sm:$0xff] %v487_v40  ;;  %v880_v44 = vsel %vm779_vm6, %v487_v40, 0.0 }
  0xe2   : > { %v1727_v45 = vadd.f32 %v938_v26, %v880_v44  ;;  %v1032_v46 = vmul.f32 %v880_v44, %v880_v44  ;;  %654 = vst [vmem:[%s1495_s28 + $0x58] sm:$0xff] %v1720_v43 }
  0xe4   : > { %v1731_v47 = vadd.f32 %v1089_v32, %v1032_v46  ;;  %v526_v48 = vpop.f32.mrf.mxu2  ;;  %v759_v32 = vadd.s32 %v1627_v8, %v726_v23 }
  0xe5   : > { %v615_v49 = vpop.f32.mrf.mxu3  ;;  %v1734_v50 = vadd.f32 %v526_v48, %v1619_v4 }
  0xe6   : > { %v489_v51 = vpop.f32.mrf.mxu0  ;;  %v1737_v52 = vadd.f32 %v615_v49, %v1625_v6  ;;  %vm791_vm8 = vcmp.lt.s32.totalorder %v759_v32, 512 }
  0xe7   : > { %v1740_v53 = vadd.f32 %v489_v51, %v1619_v4  ;;  %v578_v54 = vpop.f32.mrf.mxu1  ;;  %685 = vst [vmem:[%s1495_s28 + $0x150] sm:$0xff] %v1734_v50  ;;  %v1828_v51 = vsel %vm790_vm7, %v1639_v18, 0.0  ;;  %v1847_v18 = vsel %vm791_vm8, %v1660_v42, 0.0  ;;  %v730_v42 = vadd.s32 168, %v1623_v5 }
  0xe8   : > { %v1745_v55 = vadd.f32 %v578_v54, %v1625_v6  ;;  %686 = vst [vmem:[%s1495_s28 + $0x158] sm:$0xff] %v1737_v52  ;;  %v760_v54 = vadd.s32 %v1627_v8, %v727_v33 }
  0xe9   : > { %655 = vst [vmem:[%s1495_s28 + $0x60] sm:$0xff] %v1740_v53 }
  0xea   : > { %656 = vst [vmem:[%s1495_s28 + $0x68] sm:$0xff] %v1745_v55  ;;  %vm792_vm9 = vcmp.lt.s32.totalorder %v760_v54, 512  ;;  %v763_v54 = vadd.s32 %v1627_v8, %v730_v42 }
  0xec   : > { %v529_v56 = vpop.f32.mrf.mxu2  ;;  %vm795_vm15 = vcmp.lt.s32.totalorder %v763_v54, 512 }
  0xed   : > { %v618_v58 = vpop.f32.mrf.mxu3  ;;  %v1754_v59 = vadd.f32 %v529_v56, %v1619_v4 }
  0xee   : > { %v491_v61 = vpop.f32.mrf.mxu0  ;;  %v1757_v62 = vadd.f32 %v618_v58, %v1625_v6 }
  0xef   : > { %v1760_v63 = vadd.f32 %v491_v61, %v1619_v4  ;;  %v580_v0 = vpop.f32.mrf.mxu1  ;;  %687 = vst [vmem:[%s1495_s28 + $0x160] sm:$0xff] %v1754_v59  ;;  %v1837_v61 = vsel %vm790_vm7, %v1642_v20, 0.0  ;;  %v1857_v20 = vmul.f32 %v1828_v51, %v1828_v51 }
  0xf0   : > { %v1765_v1 = vadd.f32 %v580_v0, %v1625_v6  ;;  %688 = vst [vmem:[%s1495_s28 + $0x168] sm:$0xff] %v1757_v62  ;;  %v748_v0 = vadd.s32 %v1627_v8, %v715_v35  ;;  %v1864_v17 = vmul.f32 %v1837_v61, %v1837_v61  ;;  %v1884_v35 = vsel %vm792_vm9, %v1676_v60, 0.0 }
  0xf1   : > { %657 = vst [vmem:[%s1495_s28 + $0x70] sm:$0xff] %v1760_v63  ;;  %v1927_v42 = vmul.f32 %v1884_v35, %v1884_v35 }
  0xf2   : > { %658 = vst [vmem:[%s1495_s28 + $0x78] sm:$0xff] %v1765_v1  ;;  %vm780_vm10 = vcmp.lt.s32.totalorder %v748_v0, 512  ;;  %v720_v0 = vadd.s32 88, %v1623_v5 }
  0xf4   : > { %v531_v3 = vpop.f32.mrf.mxu2 }
  0xf5   : > { %v620_v7 = vpop.f32.mrf.mxu3  ;;  %v1774_v9 = vadd.f32 %v531_v3, %v1619_v4  ;;  %v761_v3 = vadd.s32 %v1627_v8, %v728_v37 }
  0xf6   : > { %v494_v10 = vpop.f32.mrf.mxu0  ;;  %v1777_v11 = vadd.f32 %v620_v7, %v1625_v6 }
  0xf7   : > { %v1780_v12 = vadd.f32 %v494_v10, %v1619_v4  ;;  %v583_v13 = vpop.f32.mrf.mxu1  ;;  %689 = vst [vmem:[%s1495_s28 + $0x170] sm:$0xff] %v1774_v9  ;;  %v1850_v10 = vsel %vm791_vm8, %v1656_v39, 0.0  ;;  %v717_v39 = vadd.s32 64, %v1623_v5  ;;  %vm793_vm11 = vcmp.lt.s32.totalorder %v761_v3, 512 }
  0xf8   : > { %v1785_v14 = vadd.f32 %v583_v13, %v1625_v6  ;;  %690 = vst [vmem:[%s1495_s28 + $0x178] sm:$0xff] %v1777_v11  ;;  %v762_v13 = vadd.s32 %v1627_v8, %v729_v41  ;;  %v1874_v23 = vmul.f32 %v1850_v10, %v1850_v10  ;;  %v1887_v37 = vsel %vm793_vm11, %v1688_v16, 0.0 }
  0xf9   : > { %659 = vst [vmem:[%s1495_s28 + $0x80] sm:$0xff] %v1780_v12 }
  0xfa   : > { %660 = vst [vmem:[%s1495_s28 + $0x88] sm:$0xff] %v1785_v14  ;;  %vm794_vm12 = vcmp.lt.s32.totalorder %v762_v13, 512  ;;  %v731_v13 = vadd.s32 176, %v1623_v5 }
  0xfb   : > { %v1915_v3 = vsel %vm794_vm12, %v1710_v36, 0.0 }
  0xfc   : > { %v534_v15 = vpop.f32.mrf.mxu2 }
  0xfd   : > { %v623_v19 = vpop.f32.mrf.mxu3  ;;  %v1795_v22 = vadd.f32 %v534_v15, %v1619_v4  ;;  %v716_v15 = vadd.s32 56, %v1623_v5 }
  0xfe   : > { %v496_v24 = vpop.f32.mrf.mxu0  ;;  %v1799_v25 = vadd.f32 %v623_v19, %v1625_v6  ;;  %v1870_v19 = vmul.f32 %v1847_v18, %v1847_v18 }
  0xff   : > { %v1802_v26 = vadd.f32 %v496_v24, %v1619_v4  ;;  %v585_v27 = vpop.f32.mrf.mxu1  ;;  %691 = vst [vmem:[%s1495_s28 + $0x180] sm:$0xff] %v1795_v22 }
 0x100   : > { %v1807_v28 = vadd.f32 %v585_v27, %v1625_v6  ;;  %692 = vst [vmem:[%s1495_s28 + $0x188] sm:$0xff] %v1799_v25  ;;  %v1877_v27 = vsel %vm792_vm9, %v1672_v57, 0.0 }
 0x101   : > { %661 = vst [vmem:[%s1495_s28 + $0x90] sm:$0xff] %v1802_v26 }
 0x102   : > { %662 = vst [vmem:[%s1495_s28 + $0x98] sm:$0xff] %v1807_v28 }
 0x104   : > { %v536_v40 = vpop.f32.mrf.mxu2 }
 0x105   : > { %v625_v44 = vpop.f32.mrf.mxu3  ;;  %v1822_v46 = vadd.f32 %v536_v40, %v1619_v4  ;;  %v749_v40 = vadd.s32 %v1627_v8, %v716_v15 }
 0x106   : > { %v499_v48 = vpop.f32.mrf.mxu0  ;;  %v1825_v49 = vadd.f32 %v625_v44, %v1625_v6  ;;  %v1894_v44 = vsel %vm793_vm11, %v1692_v21, 0.0  ;;  %v1911_v21 = vsel %vm794_vm12, %v1714_v38, 0.0  ;;  %v1930_v38 = vadd.s32 %v1627_v8, %v718_v31 }
 0x107   : > { %v1832_v56 = vadd.f32 %v499_v48, %v1619_v4  ;;  %v588_v58 = vpop.f32.mrf.mxu1  ;;  %693 = vst [vmem:[%s1495_s28 + $0x190] sm:$0xff] %v1822_v46  ;;  %v1897_v48 = vadd.s32 %v1627_v8, %v717_v39  ;;  %v881_v39 = vsel %vm779_vm6, %v1720_v43, 0.0  ;;  %v1937_v36 = vmul.f32 %v1894_v44, %v1894_v44 }
 0x108   : > { %2219 = vst [vmem:[#allocation2_spill] sm:$0xff] %v1825_v49  ;;  %v1842_v7 = vadd.f32 %v588_v58, %v1625_v6  ;;  %v1907_v58 = vmul.f32 %v1877_v27, %v1877_v27  ;;  %vm781_vm13 = vcmp.lt.s32.totalorder %v749_v40, 512  ;;  %v1948_v43 = vmul.f32 %v1911_v21, %v1911_v21 }
 0x109   : > { %694 = vst [vmem:[%s1495_s28 + $0x198] sm:$0xff] %v1825_v49  ;;  %v1952_v31 = vmul.f32 %v1915_v3, %v1915_v3  ;;  %vm782_vm14 = vcmp.lt.s32.totalorder %v1897_v48, 512  ;;  %vm783_vm0 = vcmp.lt.s32.totalorder %v1930_v38, 512  ;;  %v722_v40 = vadd.s32 104, %v1623_v5 }
 0x10a   : > { %663 = vst [vmem:[%s1495_s28 + $0xa0] sm:$0xff] %v1832_v56 }
 0x10b   : > { %664 = vst [vmem:[%s1495_s28 + $0xa8] sm:$0xff] %v1842_v7 }
 0x10c   : > { %v539_v24 = vpop.f32.mrf.mxu2  ;;  %2222 = vst [vmem:[#allocation5_spill] sm:$0xff] %v1911_v21 }
 0x10d   : > { %v628_v32 = vpop.f32.mrf.mxu3  ;;  %v1881_v33 = vadd.f32 %v539_v24, %v1619_v4  ;;  %2223 = vst [vmem:[#allocation6_spill] sm:$0xff] %v1937_v36  ;;  %v1941_v24 = vmul.f32 %v1887_v37, %v1887_v37 }
 0x10e   : > { %v501_v41 = vpop.f32.mrf.mxu0  ;;  %v1891_v57 = vadd.f32 %v628_v32, %v1625_v6  ;;  %2225 = vst [vmem:[#allocation8_spill] sm:$0xff] %v1948_v43  ;;  %v1033_v32 = vmul.f32 %v881_v39, %v881_v39  ;;  %v764_v43 = vadd.s32 %v1627_v8, %v731_v13  ;;  %v976_v13 = vadd.f32 %v1705_v30, %v881_v39 }
 0x10f   : > { %2220 = vst [vmem:[#allocation3_spill] sm:$0xff] %v1881_v33  ;;  %v1901_v60 = vadd.f32 %v501_v41, %v1619_v4  ;;  %v590_v16 = vpop.f32.mrf.mxu1  ;;  %v882_v41 = vsel %vm780_vm10, %v1740_v53, 0.0  ;;  %v1969_v53 = vsel %vm795_vm15, %v1737_v52, 0.0  ;;  %v884_v39 = vsel %vm781_vm13, %v1760_v63, 0.0 }
 0x110   : > { %2221 = vst [vmem:[#allocation4_spill] sm:$0xff] %v1891_v57  ;;  %v1918_v15 = vadd.f32 %v590_v16, %v1625_v6  ;;  %v883_v16 = vsel %vm780_vm10, %v1745_v55, 0.0  ;;  %v1972_v55 = vadd.s32 %v1627_v8, %v719_v29  ;;  %v1034_v21 = vmul.f32 %v882_v41, %v882_v41 }
 0x111   : > { %695 = vst [vmem:[%s1495_s28 + $0x1a0] sm:$0xff] %v1881_v33  ;;  %v1961_v33 = vsel %vm795_vm15, %v1734_v50, 0.0  ;;  %v1035_v49 = vmul.f32 %v883_v16, %v883_v16  ;;  %v1127_v52 = vadd.f32 %v1707_v34, %v1033_v32  ;;  %vm796_vm1 = vcmp.lt.s32.totalorder %v764_v43, 512 }
 0x112   : > { %696 = vst [vmem:[%s1495_s28 + $0x1a8] sm:$0xff] %v1891_v57  ;;  %v1987_v29 = vmul.f32 %v1961_v33, %v1961_v33  ;;  %v721_v34 = vadd.s32 96, %v1623_v5  ;;  %vm784_vm2 = vcmp.lt.s32.totalorder %v1972_v55, 512  ;;  %v753_v32 = vadd.s32 %v1627_v8, %v720_v0 }
 0x113   : > { %665 = vst [vmem:[%s1495_s28 + $0xb0] sm:$0xff] %v1901_v60  ;;  %v1091_v63 = vadd.f32 %v1731_v47, %v1034_v21  ;;  %v2015_v43 = vsel %vm796_vm1, %v1754_v59, 0.0  ;;  %v887_v47 = vsel %vm782_vm14, %v1785_v14, 0.0  ;;  %v889_v14 = vsel %vm783_vm0, %v1807_v28, 0.0 }
 0x114   : > { %2224 = vst [vmem:[#allocation7_spill] sm:$0xff] %v1941_v24  ;;  %v541_v57 = vpop.f32.mrf.mxu2  ;;  %v754_v59 = vadd.s32 %v1627_v8, %v721_v34  ;;  %vm785_vm3 = vcmp.lt.s32.totalorder %v753_v32, 512 }
 0x115   : > { %666 = vst [vmem:[%s1495_s28 + $0xb8] sm:$0xff] %v1918_v15  ;;  %v1966_v54 = vadd.f32 %v541_v57, %v1619_v4 }
 0x116   : > { %2226 = vst [vmem:[#allocation9_spill] sm:$0xff] %v1952_v31  ;;  %v630_v31 = vpop.f32.mrf.mxu3  ;;  %v504_v36 = vpop.f32.mrf.mxu0  ;;  %vm786_vm4 = vcmp.lt.s32.totalorder %v754_v59, 512 }
 0x117   : > { %2227 = vst [vmem:[#allocation10_spill] sm:$0xff] %v1961_v33  ;;  %v1976_v50 = vadd.f32 %v630_v31, %v1625_v6  ;;  %v1980_v57 = vadd.f32 %v504_v36, %v1619_v4  ;;  %v593_v24 = vpop.f32.mrf.mxu1  ;;  %v1990_v31 = vadd.s32 %v1627_v8, %v732_v2  ;;  %v2001_v36 = vmul.f32 %v1969_v53, %v1969_v53 }
 0x118   : > { %2228 = vst [vmem:[#allocation11_spill] sm:$0xff] %v1966_v54  ;;  %v1993_v30 = vadd.f32 %v593_v24, %v1625_v6  ;;  %v940_v2 = vadd.f32 %v1727_v45, %v882_v41  ;;  %v885_v24 = vsel %vm781_vm13, %v1765_v1, 0.0  ;;  %v886_v45 = vsel %vm782_vm14, %v1780_v12, 0.0 }
 0x119   : > { %2229 = vst [vmem:[#allocation12_spill] sm:$0xff] %v1969_v53  ;;  %v2021_v1 = vsel %vm796_vm1, %v1757_v62, 0.0  ;;  %v1037_v0 = vmul.f32 %v885_v24, %v885_v24  ;;  %v888_v62 = vsel %vm783_vm0, %v1802_v26, 0.0  ;;  %v1038_v48 = vmul.f32 %v886_v45, %v886_v45 }
 0x11a   : > { %2230 = vst [vmem:[#allocation13_spill] sm:$0xff] %v1976_v50  ;;  %v941_v12 = vadd.f32 %v940_v2, %v884_v39  ;;  %v1039_v2 = vmul.f32 %v887_v47, %v887_v47  ;;  %v1040_v38 = vmul.f32 %v888_v62, %v888_v62  ;;  %v1041_v33 = vmul.f32 %v889_v14, %v889_v14 }
 0x11b   : > { %697 = vst [vmem:[%s1495_s28 + $0x1b0] sm:$0xff] %v1966_v54  ;;  %v1128_v54 = vadd.f32 %v1127_v52, %v1035_v49  ;;  %vm797_vm7 = vcmp.lt.s32.totalorder %v1990_v31, 512  ;;  %vm1012_vm1 = vcmask 1040384  }
 0x11c   : > { %2231 = vst [vmem:[#allocation14_spill] sm:$0xff] %v1987_v29  ;;  %v544_v41 = vpop.f32.mrf.mxu2  ;;  %v942_v28 = vadd.f32 %v941_v12, %v886_v45 }
 0x11d   : > { %698 = vst [vmem:[%s1495_s28 + $0x1b8] sm:$0xff] %v1976_v50  ;;  %v977_v50 = vadd.f32 %v976_v13, %v883_v16  ;;  %v2029_v21 = vadd.f32 %v544_v41, %v1619_v4  ;;  %v755_v41 = vadd.s32 %v1627_v8, %v722_v40  ;;  %v1129_v53 = vadd.f32 %v1128_v54, %v1037_v0 }
 0x11e   : > { %2232 = vst [vmem:[#allocation15_spill] sm:$0xff] %v2001_v36  ;;  %v1036_v36 = vmul.f32 %v884_v39, %v884_v39  ;;  %v633_v49 = vpop.f32.mrf.mxu3  ;;  %v506_v16 = vpop.f32.mrf.mxu0  ;;  %v723_v39 = vadd.s32 112, %v1623_v5  ;;  %v724_v54 = vadd.s32 120, %v1623_v5 }
 0x11f   : > { %667 = vst [vmem:[%s1495_s28 + $0xc0] sm:$0xff] %v1980_v57  ;;  %v2035_v13 = vadd.f32 %v633_v49, %v1625_v6  ;;  %v507_v52 = vadd.f32 %v506_v16, %v1619_v4  ;;  %v595_v34 = vpop.f32.mrf.mxu1  ;;  %v978_v26 = vadd.f32 %v977_v50, %v885_v24  ;;  %v891_v24 = vsel %vm784_vm2, %v1842_v7, 0.0 }
 0x120   : > { %668 = vst [vmem:[%s1495_s28 + $0xc8] sm:$0xff] %v1993_v30  ;;  %v596_v49 = vadd.f32 %v595_v34, %v1625_v6  ;;  %v1092_v29 = vadd.f32 %v1091_v63, %v1036_v36  ;;  %v756_v40 = vadd.s32 %v1627_v8, %v723_v39  ;;  %v1130_v36 = vadd.f32 %v1129_v53, %v1039_v2 }
 0x121   : > { %2233 = vst [vmem:[#allocation16_spill] sm:$0xff] %v2029_v21  ;;  %v979_v16 = vadd.f32 %v978_v26, %v887_v47  ;;  %v943_v63 = vadd.f32 %v942_v28, %v888_v62  ;;  %vm787_vm5 = vcmp.lt.s32.totalorder %v755_v41, 512  ;;  %v1043_v55 = vmul.f32 %v891_v24, %v891_v24 }
 0x122   : > { %699 = vst [vmem:[%s1495_s28 + $0x1c0] sm:$0xff] %v2029_v21  ;;  %v890_v21 = vsel %vm784_vm2, %v1832_v56, 0.0  ;;  %v1093_v50 = vadd.f32 %v1092_v29, %v1038_v48  ;;  %v892_v56 = vsel %vm785_vm3, %v1901_v60, 0.0  ;;  %v1131_v7 = vadd.f32 %v1130_v36, %v1041_v33 }
 0x123   : > { %700 = vst [vmem:[%s1495_s28 + $0x1c8] sm:$0xff] %v2035_v13  ;;  %v980_v0 = vadd.f32 %v979_v16, %v889_v14  ;;  %v1042_v12 = vmul.f32 %v890_v21, %v890_v21  ;;  %v893_v53 = vsel %vm785_vm3, %v1918_v15, 0.0  ;;  %v894_v34 = vsel %vm786_vm4, %v1980_v57, 0.0 }
 0x124   : > { %669 = vst [vmem:[%s1495_s28 + $0xd0] sm:$0xff] %v507_v52  ;;  %v546_v45 = vpop.f32.mrf.mxu2  ;;  %v1094_v47 = vadd.f32 %v1093_v50, %v1040_v38  ;;  %vm788_vm6 = vcmp.lt.s32.totalorder %v756_v40, 512  ;;  %v757_v26 = vadd.s32 %v1627_v8, %v724_v54  ;;  %v944_v33 = vadd.f32 %v943_v63, %v890_v21 }
 0x125   : > { %670 = vst [vmem:[%s1495_s28 + $0xd8] sm:$0xff] %v596_v49  ;;  %v2061_v48 = vadd.f32 %v546_v45, %v1619_v4  ;;  %v1044_v32 = vmul.f32 %v892_v56, %v892_v56  ;;  %v895_v15 = vsel %vm786_vm4, %v1993_v30, 0.0  ;;  %v981_v57 = vadd.f32 %v980_v0, %v891_v24 }
 0x126   : > { %v635_v29 = vpop.f32.mrf.mxu3  ;;  %v509_v62 = vpop.f32.mrf.mxu0  ;;  %v1095_v38 = vadd.f32 %v1094_v47, %v1042_v12  ;;  %v1045_v28 = vmul.f32 %v893_v53, %v893_v53  ;;  %v896_v16 = vsel %vm787_vm5, %v507_v52, 0.0  ;;  %v1132_v50 = vadd.f32 %v1131_v7, %v1043_v55 }
 0x127   : > { %v2066_v14 = vadd.f32 %v635_v29, %v1625_v6  ;;  %v510_v60 = vadd.f32 %v509_v62, %v1619_v4  ;;  %v598_v39 = vpop.f32.mrf.mxu1  ;;  %701 = vst [vmem:[%s1495_s28 + $0x1d0] sm:$0xff] %v2061_v48  ;;  %v945_v54 = vadd.f32 %v944_v33, %v892_v56  ;;  %v1046_v36 = vmul.f32 %v894_v34, %v894_v34 }
 0x128   : > { %v599_v2 = vadd.f32 %v598_v39, %v1625_v6  ;;  %v897_v45 = vsel %vm787_vm5, %v596_v49, 0.0  ;;  %v982_v59 = vadd.f32 %v981_v57, %v893_v53  ;;  %v1047_v30 = vmul.f32 %v895_v15, %v895_v15 }
 0x129   : > { %702 = vst [vmem:[%s1495_s28 + $0x1d8] sm:$0xff] %v2066_v14  ;;  %v898_v21 = vsel %vm788_vm6, %v510_v60, 0.0  ;;  %vm789_vm8 = vcmp.lt.s32.totalorder %v757_v26, 512  ;;  %v1096_v63 = vadd.f32 %v1095_v38, %v1044_v32  ;;  %v946_v47 = vadd.f32 %v945_v54, %v894_v34 }
 0x12a   : > { %671 = vst [vmem:[%s1495_s28 + $0xe0] sm:$0xff] %v510_v60  ;;  %v1048_v24 = vmul.f32 %v896_v16, %v896_v16  ;;  %v899_v0 = vsel %vm788_vm6, %v599_v2, 0.0  ;;  %v1133_v12 = vadd.f32 %v1132_v50, %v1045_v28  ;;  %v983_v56 = vadd.f32 %v982_v59, %v895_v15 }
 0x12b   : > { %672 = vst [vmem:[%s1495_s28 + $0xe8] sm:$0xff] %v599_v2  ;;  %v1049_v29 = vmul.f32 %v897_v45, %v897_v45  ;;  %v1097_v7 = vadd.f32 %v1096_v63, %v1046_v36  ;;  %v947_v55 = vadd.f32 %v946_v47, %v896_v16  ;;  %v1050_v53 = vmul.f32 %v898_v21, %v898_v21 }
 0x12c   : > { %v549_v52 = vpop.f32.mrf.mxu2  ;;  %v1134_v40 = vadd.f32 %v1133_v12, %v1047_v30  ;;  %v984_v60 = vadd.f32 %v983_v56, %v897_v45  ;;  %v1051_v39 = vmul.f32 %v899_v0, %v899_v0  ;;  %v733_v15 = vadd.s32 192, %v1623_v5 }
 0x12d   : > { %v2087_v49 = vadd.f32 %v549_v52, %v1619_v4  ;;  %v1098_v2 = vadd.f32 %v1097_v7, %v1048_v24  ;;  %v948_v38 = vadd.f32 %v947_v55, %v898_v21  ;;  %v734_v28 = vadd.s32 200, %v1623_v5 }
 0x12e   : > { %v638_v41 = vpop.f32.mrf.mxu3  ;;  %v511_v62 = vpop.f32.mrf.mxu0  ;;  %v1135_v16 = vadd.f32 %v1134_v40, %v1049_v29  ;;  %v985_v50 = vadd.f32 %v984_v60, %v899_v0  ;;  %v2106_v21 = vmul.f32 %v2015_v43, %v2015_v43  ;;  %v916_v0 = vsel %vm797_vm7, %v1774_v9, 0.0 }
 0x12f   : > { %v2090_v34 = vadd.f32 %v638_v41, %v1625_v6  ;;  %v512_v33 = vadd.f32 %v511_v62, %v1619_v4  ;;  %v600_v32 = vpop.f32.mrf.mxu1  ;;  %703 = vst [vmem:[%s1495_s28 + $0x1e0] sm:$0xff] %v2087_v49  ;;  %v1099_v36 = vadd.f32 %v1098_v2, %v1050_v53  ;;  %v766_v52 = vadd.s32 %v1627_v8, %v733_v15 }
 0x130   : > { %v601_v57 = vadd.f32 %v600_v32, %v1625_v6  ;;  %v1136_v63 = vadd.f32 %v1135_v16, %v1051_v39  ;;  %v767_v26 = vadd.s32 %v1627_v8, %v734_v28  ;;  %v735_v62 = vadd.s32 208, %v1623_v5  ;;  %v2235_v16 = vld [vmem:[#allocation2_spill] sm:$0xff] }
 0x131   : > { %704 = vst [vmem:[%s1495_s28 + $0x1e8] sm:$0xff] %v2090_v34  ;;  %v900_v54 = vsel %vm789_vm8, %v512_v33, 0.0  ;;  %v1067_v60 = vmul.f32 %v2021_v1, %v2021_v1  ;;  %vm798_vm9 = vcmp.lt.s32.totalorder %v766_v52, 512  ;;  %v736_v32 = vadd.s32 216, %v1623_v5 }
 0x132   : > { %673 = vst [vmem:[%s1495_s28 + $0xf0] sm:$0xff] %v512_v33  ;;  %v949_v45 = vadd.f32 %v948_v38, %v900_v54  ;;  %v1052_v59 = vmul.f32 %v900_v54, %v900_v54  ;;  %v901_v30 = vsel %vm789_vm8, %v601_v57, 0.0  ;;  %v1068_v33 = vmul.f32 %v916_v0, %v916_v0  ;;  %v2236_v54 = vld [vmem:[#allocation5_spill] sm:$0xff] }
 0x133   : > { %674 = vst [vmem:[%s1495_s28 + $0xf8] sm:$0xff] %v601_v57  ;;  %v986_v47 = vadd.f32 %v985_v50, %v901_v30  ;;  %v1053_v24 = vmul.f32 %v901_v30, %v901_v30  ;;  %vm799_vm10 = vcmp.lt.s32.totalorder %v767_v26, 512  ;;  %v737_v30 = vadd.s32 224, %v1623_v5 }
 0x134   : > { %v950_v12 = vadd.f32 %v949_v45, %v1828_v51  ;;  %v1100_v56 = vadd.f32 %v1099_v36, %v1052_v59  ;;  %v551_v29 = vpop.f32.mrf.mxu2  ;;  %v920_v57 = vsel %vm799_vm10, %v1822_v46, 0.0  ;;  %v921_v50 = vsel %vm799_vm10, %v2235_v16, 0.0  ;;  %v2237_v36 = vld [vmem:[#allocation6_spill] sm:$0xff]  ;;  %v2239_v59 = vld [vmem:[#allocation9_spill] sm:$0xff] }
 0x135   : > { %v987_v41 = vadd.f32 %v986_v47, %v1837_v61  ;;  %v1137_v7 = vadd.f32 %v1136_v63, %v1053_v24  ;;  %v2116_v53 = vadd.f32 %v551_v29, %v1619_v4  ;;  %v917_v61 = vsel %vm797_vm7, %v1777_v11, 0.0  ;;  %v2241_v24 = vld [vmem:[#allocation8_spill] sm:$0xff]  ;;  %v2243_v29 = vld [vmem:[#allocation14_spill] sm:$0xff] }
 0x136   : > { %v640_v55 = vpop.f32.mrf.mxu3  ;;  %v951_v9 = vadd.f32 %v950_v12, %v1850_v10  ;;  %v1101_v40 = vadd.f32 %v1100_v56, %v1857_v20  ;;  %v918_v20 = vsel %vm798_vm9, %v1795_v22, 0.0  ;;  %v1072_v63 = vmul.f32 %v920_v57, %v920_v57  ;;  %v2242_v12 = vld [vmem:[#allocation3_spill] sm:$0xff] }
 0x137   : > { %v2122_v51 = vadd.f32 %v640_v55, %v1625_v6  ;;  %v988_v39 = vadd.f32 %v987_v41, %v1847_v18  ;;  %v1138_v4 = vadd.f32 %v1137_v7, %v1864_v17  ;;  %705 = vst [vmem:[%s1495_s28 + $0x1f0] sm:$0xff] %v2116_v53  ;;  %v768_v17 = vadd.s32 %v1627_v8, %v735_v62  ;;  %v2244_v62 = vld [vmem:[#allocation4_spill] sm:$0xff] }
 0x138   : > { %v952_v10 = vadd.f32 %v951_v9, %v1877_v27  ;;  %v1102_v6 = vadd.f32 %v1101_v40, %v1874_v23  ;;  %v1069_v27 = vmul.f32 %v917_v61, %v917_v61  ;;  %v919_v23 = vsel %vm798_vm9, %v1799_v25, 0.0  ;;  %v2238_v25 = vld [vmem:[#allocation10_spill] sm:$0xff]  ;;  %v2245_v40 = vld [vmem:[#allocation15_spill] sm:$0xff] }
 0x139   : > { %706 = vst [vmem:[%s1495_s28 + $0x1f8] sm:$0xff] %v2122_v51  ;;  %v989_v11 = vadd.f32 %v988_v39, %v1884_v35  ;;  %v1139_v18 = vadd.f32 %v1138_v4, %v1870_v19  ;;  %v1070_v38 = vmul.f32 %v918_v20, %v918_v20  ;;  %v2234_v19 = vld [vmem:[#allocation7_spill] sm:$0xff]  ;;  %vm800_vm11 = vcmp.lt.s32.totalorder %v768_v17, 512 }
 0x13a   : > { %v953_v31 = vadd.f32 %v952_v10, %v1887_v37  ;;  %v1103_v15 = vadd.f32 %v1102_v6, %v1907_v58  ;;  %v769_v37 = vadd.s32 %v1627_v8, %v736_v32  ;;  %v1071_v46 = vmul.f32 %v919_v23, %v919_v23 }
 0x13b   : > { %v990_v2 = vadd.f32 %v989_v11, %v1894_v44  ;;  %v1140_v22 = vadd.f32 %v1139_v18, %v1927_v42  ;;  %v922_v56 = vsel %vm800_vm11, %v2242_v12, 0.0  ;;  %v738_v7 = vadd.s32 232, %v1623_v5 }
 0x13c   : > { %v954_v35 = vadd.f32 %v953_v31, %v1915_v3  ;;  %v1104_v28 = vadd.f32 %v1103_v15, %v2234_v19  ;;  %v2240_v3 = vld [vmem:[#allocation12_spill] sm:$0xff]  ;;  %v1073_v55 = vmul.f32 %v921_v50, %v921_v50  ;;  %v923_v9 = vsel %vm800_vm11, %v2244_v62, 0.0 }
 0x13d   : > { %v991_v58 = vadd.f32 %v990_v2, %v2236_v54  ;;  %v1141_v45 = vadd.f32 %v1140_v22, %v2237_v36  ;;  %vm801_vm12 = vcmp.lt.s32.totalorder %v769_v37, 512  ;;  %v770_v10 = vadd.s32 %v1627_v8, %v737_v30  ;;  %v2248_v36 = vld [vmem:[#allocation16_spill] sm:$0xff] }
 0x13e   : > { %v955_v44 = vadd.f32 %v954_v35, %v2238_v25  ;;  %v1105_v42 = vadd.f32 %v1104_v28, %v2239_v59  ;;  %v1074_v11 = vmul.f32 %v922_v56, %v922_v56  ;;  %v1075_v31 = vmul.f32 %v923_v9, %v923_v9  ;;  %v2246_v35 = vld [vmem:[#allocation11_spill] sm:$0xff] }
 0x13f   : > { %v992_v47 = vadd.f32 %v991_v58, %v2240_v3  ;;  %v1142_v52 = vadd.f32 %v1141_v45, %v2241_v24  ;;  %v771_v22 = vadd.s32 %v1627_v8, %v738_v7  ;;  %v924_v19 = vsel %vm801_vm12, %v2246_v35, 0.0 }
 0x140   : > { %v1106_v26 = vadd.f32 %v1105_v42, %v2243_v29  ;;  %v956_v41 = vadd.f32 %v955_v44, %v2015_v43  ;;  %v739_v43 = vadd.s32 240, %v1623_v5  ;;  %v740_v16 = vadd.s32 248, %v1623_v5 }
 0x141   : > { %v1143_v39 = vadd.f32 %v1142_v52, %v2245_v40  ;;  %v993_v4 = vadd.f32 %v992_v47, %v2021_v1  ;;  %vm802_vm13 = vcmp.lt.s32.totalorder %v770_v10, 512  ;;  %v1076_v45 = vmul.f32 %v924_v19, %v924_v19 }
 0x142   : > { %v957_v6 = vadd.f32 %v956_v41, %v916_v0  ;;  %v1107_v32 = vadd.f32 %v1106_v26, %v2106_v21  ;;  %v2247_v0 = vld [vmem:[#allocation13_spill] sm:$0xff]  ;;  %vm803_vm14 = vcmp.lt.s32.totalorder %v771_v22, 512  ;;  %v773_v37 = vadd.s32 %v1627_v8, %v740_v16 }
 0x143   : > { %v994_v18 = vadd.f32 %v993_v4, %v917_v61  ;;  %v1144_v17 = vadd.f32 %v1143_v39, %v1067_v60  ;;  %v925_v21 = vsel %vm801_vm12, %v2247_v0, 0.0 }
 0x144   : > { %v958_v15 = vadd.f32 %v957_v6, %v918_v20  ;;  %v1108_v2 = vadd.f32 %v1107_v32, %v1068_v33  ;;  %v926_v20 = vsel %vm802_vm13, %v2248_v36, 0.0  ;;  %v772_v33 = vadd.s32 %v1627_v8, %v739_v43 }
 0x145   : > { %v995_v1 = vadd.f32 %v994_v18, %v919_v23  ;;  %v1145_v28 = vadd.f32 %v1144_v17, %v1069_v27  ;;  %v927_v27 = vsel %vm802_vm13, %v2035_v13, 0.0  ;;  %v1077_v59 = vmul.f32 %v925_v21, %v925_v21 }
 0x146   : > { %v959_v61 = vadd.f32 %v958_v15, %v920_v57  ;;  %v1109_v60 = vadd.f32 %v1108_v2, %v1070_v38  ;;  %v1078_v57 = vmul.f32 %v926_v20, %v926_v20  ;;  %vm804_vm15 = vcmp.lt.s32.totalorder %v772_v33, 512 }
 0x147   : > { %v996_v54 = vadd.f32 %v995_v1, %v921_v50  ;;  %v1146_v58 = vadd.f32 %v1145_v28, %v1071_v46  ;;  %v928_v46 = vsel %vm803_vm14, %v2061_v48, 0.0  ;;  %v1079_v3 = vmul.f32 %v927_v27, %v927_v27 }
 0x148   : > { %v960_v25 = vadd.f32 %v959_v61, %v922_v56  ;;  %v1110_v44 = vadd.f32 %v1109_v60, %v1072_v63  ;;  %v929_v13 = vsel %vm803_vm14, %v2066_v14, 0.0  ;;  %v930_v8 = vsel %vm804_vm15, %v2087_v49, 0.0 }
 0x149   : > { %v997_v23 = vadd.f32 %v996_v54, %v923_v9  ;;  %v1147_v5 = vadd.f32 %v1146_v58, %v1073_v55  ;;  %vm805_vm0 = vcmp.lt.s32.totalorder %v773_v37, 512  ;;  %v1080_v29 = vmul.f32 %v928_v46, %v928_v46 }
 0x14a   : > { %v961_v42 = vadd.f32 %v960_v25, %v924_v19  ;;  %v1111_v38 = vadd.f32 %v1110_v44, %v1074_v11  ;;  %v931_v26 = vsel %vm804_vm15, %v2090_v34, 0.0  ;;  %v1081_v48 = vmul.f32 %v929_v13, %v929_v13 }
 0x14b   : > { %v998_v50 = vadd.f32 %v997_v23, %v925_v21  ;;  %v1148_v30 = vadd.f32 %v1147_v5, %v1075_v31  ;;  %v932_v55 = vsel %vm805_vm0, %v2116_v53, 0.0  ;;  %v1082_v40 = vmul.f32 %v930_v8, %v930_v8 }
 0x14c   : > { %v962_v47 = vadd.f32 %v961_v42, %v926_v20  ;;  %v1112_v63 = vadd.f32 %v1111_v38, %v1076_v45  ;;  %v933_v14 = vsel %vm805_vm0, %v2122_v51, 0.0  ;;  %v1083_v10 = vmul.f32 %v931_v26, %v931_v26  ;;  %v1021_v42 = vld [vmem:[%s2208_s5] sm:$0x3] }
 0x14d   : > { %v999_v24 = vadd.f32 %v998_v50, %v927_v27  ;;  %v1149_v52 = vadd.f32 %v1148_v30, %v1077_v59  ;;  %v1084_v32 = vmul.f32 %v932_v55, %v932_v55  ;;  %v1085_v17 = vmul.f32 %v933_v14, %v933_v14  ;;  %v934_v27 = vld [vmem:[%s2207_s4] sm:$0x3] }
 0x14e   : > { %v1113_v12 = vadd.f32 %v1112_v63, %v1078_v57  ;;  %v963_v56 = vadd.f32 %v962_v47, %v928_v46  ;;  %v2249_v59 = vlaneseq }
 0x14f   : > { %v1150_v41 = vadd.f32 %v1149_v52, %v1079_v3  ;;  %v1000_v7 = vadd.f32 %v999_v24, %v929_v13 }
 0x150   : > { %v1114_v62 = vadd.f32 %v1113_v12, %v1080_v29  ;;  %v964_v9 = vadd.f32 %v963_v56, %v930_v8  ;;  %vm1018_vm2 = vcmp.lt.s32.totalorder %v2249_v59, 256 }
 0x151   : > { %v1151_v39 = vadd.f32 %v1150_v41, %v1081_v48  ;;  %v1001_v4 = vadd.f32 %v1000_v7, %v931_v26 }
 0x152   : > { %v1115_v49 = vadd.f32 %v1114_v62, %v1082_v40  ;;  %v965_v6 = vadd.f32 %v964_v9, %v932_v55 }
 0x153   : > { %v1152_v11 = vadd.f32 %v1151_v39, %v1083_v10  ;;  %v1002_v18 = vadd.f32 %v1001_v4, %v933_v14 }
 0x154   : > { %v966_v34 = vrot.slane %v965_v6, 4  ;;  %v1116_v43 = vadd.f32 %v1115_v49, %v1084_v32 }
 0x155   : > { %v1003_v31 = vrot.slane %v1002_v18, 4  ;;  %v1153_v15 = vadd.f32 %v1152_v11, %v1085_v17 }
 0x156   : > { %v967_v2 = vadd.f32 %v966_v34, %v965_v6  ;;  %v1117_v53 = vrot.slane %v1116_v43, 4 }
 0x157   : > { %v1004_v22 = vadd.f32 %v1003_v31, %v1002_v18  ;;  %v1154_v35 = vrot.slane %v1153_v15, 4 }
 0x158   : > { %v968_v19 = vrot.slane %v967_v2, 2  ;;  %v1118_v1 = vadd.f32 %v1117_v53, %v1116_v43 }
 0x159   : > { %v1005_v51 = vrot.slane %v1004_v22, 2  ;;  %v1155_v28 = vadd.f32 %v1154_v35, %v1153_v15 }
 0x15a   : > { %v969_v16 = vadd.f32 %v968_v19, %v967_v2  ;;  %v1119_v0 = vrot.slane %v1118_v1, 2 }
 0x15b   : > { %v1006_v21 = vadd.f32 %v1005_v51, %v1004_v22  ;;  %v1156_v61 = vrot.slane %v1155_v28, 2 }
 0x15c   : > { %v1120_v60 = vadd.f32 %v1119_v0, %v1118_v1  ;;  %v970_v36 = vrot.slane %v969_v16, 1 }
 0x15d   : > { %v1007_v54 = vrot.slane %v1006_v21, 1  ;;  %v1157_v58 = vadd.f32 %v1156_v61, %v1155_v28 }
 0x15e   : > { %v1121_v45 = vrot.slane %v1120_v60, 1  ;;  %v971_v23 = vadd.f32 %v970_v36, %v969_v16 }
 0x15f   : > { %v1008_v20 = vadd.f32 %v1007_v54, %v1006_v21  ;;  %v1158_v33 = vrot.slane %v1157_v58, 1 }
 0x160   : > { %v1122_v57 = vadd.f32 %v1121_v45, %v1120_v60 }
 0x161   : > { %v1011_v25 = vrot.slane %v1008_v20, 7  ;;  %v1159_v44 = vadd.f32 %v1158_v33, %v1157_v58 }
 0x163   : > { %v1162_v5 = vrot.slane %v1159_v44, 7  ;;  %v1013_v37 = vsel %vm1012_vm1, %v971_v23, %v1011_v25 }
 0x164   : > { %v1015_v38 = vadd.f32 %v1013_v37, %v934_v27 }
 0x165   : > { %v1163_v50 = vsel %vm1012_vm1, %v1122_v57, %v1162_v5 }
 0x166   : > { %1020 = vst.msk [vmem:[%s2207_s4] sm:$0x3] %vm1018_vm2, %v1015_v38  ;;  %v1165_v30 = vadd.f32 %v1163_v50, %v1021_v42 }
 0x168   : > { %1166 = vst.msk [vmem:[%s2208_s5] sm:$0x3] %vm1018_vm2, %v1165_v30 }
 0x169 PF: > { %s16_s18 = sadd.s32 1, %s1443_s18  }
 0x16a   : > { %p13_p5 = scmp.ge.s32.totalorder %s16_s18, 4  }
 0x16c   :  { %15 = sbr.rel (!%p13_p5) target bundleno = 1 (0x1), region = 82 }

// kernel: apply_node_func.4
= control target key start
LH: loop header
LB: loop body
LE: loop exit
PB: predicated region body
PF: predicated region fallthrough
CT: control target
= control target key end

     0   :  { %s1473_s24 = smov 0   ;;  %s2016_s0 = inlined_call_operand.vmem [shape: f32[512,256], index: 0, kind: input, shape index: {}]   ;;  %s2017_s1 = inlined_call_operand.vmem [shape: f32[1,256], index: 1, kind: input, shape index: {}]   ;;  %s2018_s2 = inlined_call_operand.vmem [shape: f32[1,256], index: 2, kind: input, shape index: {}]   ;;  %s2019_s3 = inlined_call_operand.vmem [shape: bf16[256,128], index: 3, kind: input, shape index: {}]   ;;  %s2020_s4 = inlined_call_operand.vmem [shape: f32[1,128], index: 4, kind: input, shape index: {}]   ;;  %s2021_s5 = inlined_call_operand.vmem [shape: f32[512,128], index: 5, kind: output, shape index: {0}]   ;;  %s2022_s6 = inlined_call_operand.vmem [shape: f32[1,128], index: 6, kind: output, shape index: {1}]   ;;  %s2023_s7 = inlined_call_operand.vmem [shape: f32[1,128], index: 7, kind: output, shape index: {2}]  }
   0x1 LB: > { %s1479_s25 = sadd.s32 4294967295, %s1430_s24   ;;  %p1307_p0 = scmp.ge.s32.totalorder %s1430_s24, 1  ;;  %s1430_s24 = sphi %s1473_s24, %s18_s24  }
   0x2   : > { %p234_p1 = scmp.lt.s32.totalorder %s1430_s24, 3 }
   0x4   : > { %p235_p2 = pnand %p1307_p0, %p234_p1 }
   0x5   : > { %s1308_s26 = sshll.u32 (!%p235_p2), %s1479_s25, 5  ;;  %p1313_p4 = scmp.ne.s32.totalorder (!%p235_p2), %s1479_s25, 0 }
   0x6   : > { %238 = sbr.rel (%p235_p2) target bundleno = 353 (0x161), region = 40  ;;  %p268_p3 = scmp.lt.s32.totalorder (!%p235_p2), %s1308_s26, 63 }
   0xb   : > { %s2025_s26 = smov (!%p268_p3, %s1308_s26), 63  ;;  %283 = sbr.rel (%p1313_p4) target bundleno = 19 (0x13), region = 44 }
   0xc   : > { %s1381_s27 = sshll.u32 %s2025_s26, 4  ;;  %s1312_s28 = sshll.u32 %s2025_s26, 3 }
   0xd   : > { %s1487_s8 = scalar_lea.vmem %s2016_s0, %s1381_s27  ;;  %s1492_s11 = scalar_lea.vmem %s2021_s5, %s1312_s28 }
  0x10   : > { %v1432_v0 = vmov 0.0  }
  0x11   : > { %284 = vst [vmem:[%s2022_s6] sm:$0x1] %v1432_v0 }
  0x12   : > { %285 = vst [vmem:[%s2023_s7] sm:$0x1] %v1432_v0 }
  0x13 PF: > { %v1389_v1 = vld [vmem:[%s2019_s3 + $0x38] sm:$0xff]  ;;  %v1388_v3 = vld [vmem:[%s2019_s3 + $0x30] sm:$0xff]  ;;  %v1387_v5 = vld [vmem:[%s2019_s3 + $0x28] sm:$0xff]  ;;  %s1378_s15 = sshll.u32 %s1479_s25, 8 }
  0x14   : > { %v1397_v2 = vld [vmem:[%s2019_s3 + $0x78] sm:$0xff]  ;;  %718 = vmatpush.bf16.msra.mxu0 %v1389_v1  ;;  %v1396_v4 = vld [vmem:[%s2019_s3 + $0x70] sm:$0xff]  ;;  %1398 = vmatpush.bf16.msra.mxu2 %v1389_v1  ;;  %v1395_v6 = vld [vmem:[%s2019_s3 + $0x68] sm:$0xff] }
  0x15   : > { %807 = vmatpush.bf16.msra.mxu1 %v1397_v2  ;;  %1406 = vmatpush.bf16.msra.mxu3 %v1397_v2  ;;  %v350_v7 = vld [vmem:[%s2017_s1] sm:$0x3]  ;;  %v1385_v10 = vld [vmem:[%s2019_s3 + $0x18] sm:$0xff]  ;;  %v288_v14 = vld [vmem:[%s1487_s8 + $0x10] sm:$0xff] }
  0x16   : > { %v1386_v8 = vld [vmem:[%s2019_s3 + $0x20] sm:$0xff]  ;;  %v1393_v11 = vld [vmem:[%s2019_s3 + $0x58] sm:$0xff]  ;;  %v1534_v12 = vperm.slane %v350_v7, 0  ;;  %v1541_v16 = vperm.slane %v350_v7, 1  ;;  %v287_v17 = vld [vmem:[%s1487_s8 + $0x8] sm:$0xff] }
  0x17   : > { %v1394_v9 = vld [vmem:[%s2019_s3 + $0x60] sm:$0xff]  ;;  %v289_v18 = vld [vmem:[%s1487_s8 + $0x18] sm:$0xff]  ;;  %v320_v20 = vld [vmem:[%s1487_s8 + $0x110] sm:$0xff] }
  0x18   : > { %719 = vmatpush.bf16.msra.mxu0 %v1388_v3  ;;  %1399 = vmatpush.bf16.msra.mxu2 %v1388_v3  ;;  %v286_v13 = vld [vmem:[%s1487_s8] sm:$0xff]  ;;  %v319_v21 = vld [vmem:[%s1487_s8 + $0x108] sm:$0xff]  ;;  %v321_v22 = vld [vmem:[%s1487_s8 + $0x118] sm:$0xff]  ;;  %v358_v26 = vmul.f32 %v1534_v12, %v288_v14  ;;  %v357_v27 = vmul.f32 %v1541_v16, %v287_v17  ;;  %v359_v28 = vmul.f32 %v1541_v16, %v289_v18 }
  0x19   : > { %808 = vmatpush.bf16.msra.mxu1 %v1396_v4  ;;  %1407 = vmatpush.bf16.msra.mxu3 %v1396_v4  ;;  %v420_v15 = vld [vmem:[%s2018_s2] sm:$0x3]  ;;  %v356_v23 = vmul.f32 %v1534_v12, %v286_v13  ;;  %v1384_v30 = vld [vmem:[%s2019_s3 + $0x10] sm:$0xff]  ;;  %v390_v32 = vmul.f32 %v1534_v12, %v320_v20  ;;  %v389_v33 = vmul.f32 %v1541_v16, %v319_v21  ;;  %v1383_v40 = vld [vmem:[%s2019_s3 + $0x8] sm:$0xff] }
  0x1a   : > { %v318_v19 = vld [vmem:[%s1487_s8 + $0x100] sm:$0xff]  ;;  %v1550_v24 = vperm.slane %v420_v15, 0  ;;  %v1552_v25 = vperm.slane %v420_v15, 1  ;;  %v1392_v31 = vld [vmem:[%s2019_s3 + $0x50] sm:$0xff]  ;;  %v391_v34 = vmul.f32 %v1541_v16, %v321_v22  ;;  %v1391_v41 = vld [vmem:[%s2019_s3 + $0x48] sm:$0xff] }
  0x1b   : > { %v388_v29 = vmul.f32 %v1534_v12, %v318_v19  ;;  %v1382_v49 = vld [vmem:[%s2019_s3] sm:$0xff]  ;;  %v292_v58 = vld [vmem:[%s1487_s8 + $0x30] sm:$0xff]  ;;  %v291_v59 = vld [vmem:[%s1487_s8 + $0x28] sm:$0xff] }
  0x1c   : > { %720 = vmatpush.bf16.msra.mxu0 %v1387_v5  ;;  %1400 = vmatpush.bf16.msra.mxu2 %v1387_v5  ;;  %v426_v35 = vadd.f32 %v1550_v24, %v356_v23  ;;  %v428_v36 = vadd.f32 %v1550_v24, %v358_v26  ;;  %v427_v37 = vadd.f32 %v1552_v25, %v357_v27  ;;  %v1390_v50 = vld [vmem:[%s2019_s3 + $0x40] sm:$0xff]  ;;  %v293_v60 = vld [vmem:[%s1487_s8 + $0x38] sm:$0xff]  ;;  %v324_v0 = vld [vmem:[%s1487_s8 + $0x130] sm:$0xff] }
  0x1d   : > { %809 = vmatpush.bf16.msra.mxu1 %v1395_v6  ;;  %1408 = vmatpush.bf16.msra.mxu3 %v1395_v6  ;;  %v429_v38 = vadd.f32 %v1552_v25, %v359_v28  ;;  %v458_v39 = vadd.f32 %v1550_v24, %v388_v29  ;;  %v460_v42 = vadd.f32 %v1550_v24, %v390_v32  ;;  %v290_v57 = vld [vmem:[%s1487_s8 + $0x20] sm:$0xff]  ;;  %v323_v1 = vld [vmem:[%s1487_s8 + $0x128] sm:$0xff]  ;;  %v325_v2 = vld [vmem:[%s1487_s8 + $0x138] sm:$0xff] }
  0x1e   : > { %v459_v43 = vadd.f32 %v1552_v25, %v389_v33  ;;  %v461_v44 = vadd.f32 %v1552_v25, %v391_v34  ;;  %v490_v45 = vmax.f32 %v426_v35, 0.0  ;;  %v492_v46 = vmax.f32 %v428_v36, 0.0  ;;  %v322_v63 = vld [vmem:[%s1487_s8 + $0x120] sm:$0xff]  ;;  %v296_v34 = vld [vmem:[%s1487_s8 + $0x50] sm:$0xff]  ;;  %v295_v35 = vld [vmem:[%s1487_s8 + $0x48] sm:$0xff] }
  0x1f   : > { %v491_v47 = vmax.f32 %v427_v37, 0.0  ;;  %v493_v48 = vmax.f32 %v429_v38, 0.0  ;;  %v522_v51 = vmax.f32 %v458_v39, 0.0  ;;  %v524_v52 = vmax.f32 %v460_v42, 0.0  ;;  %v294_v33 = vld [vmem:[%s1487_s8 + $0x40] sm:$0xff]  ;;  %v297_v36 = vld [vmem:[%s1487_s8 + $0x58] sm:$0xff] }
  0x20   : > { %721 = vmatpush.bf16.msra.mxu0 %v1386_v8  ;;  %1401 = vmatpush.bf16.msra.mxu2 %v1386_v8  ;;  %v523_v53 = vmax.f32 %v459_v43, 0.0  ;;  %v525_v54 = vmax.f32 %v461_v44, 0.0  ;;  %v554_v55 = vpack.c.bf16 %v492_v46, %v490_v45  ;;  %v360_v3 = vmul.f32 %v1534_v12, %v290_v57  ;;  %v326_v39 = vld [vmem:[%s1487_s8 + $0x140] sm:$0xff]  ;;  %v329_v42 = vld [vmem:[%s1487_s8 + $0x158] sm:$0xff] }
  0x21   : > { %810 = vmatpush.bf16.msra.mxu1 %v1394_v9  ;;  %1409 = vmatpush.bf16.msra.mxu3 %v1394_v9  ;;  %v555_v56 = vpack.c.bf16 %v493_v48, %v491_v47  ;;  %v570_v61 = vpack.c.bf16 %v524_v52, %v522_v51  ;;  %v362_v4 = vmul.f32 %v1534_v12, %v292_v58 }
  0x22   : > { %v571_v62 = vpack.c.bf16 %v525_v54, %v523_v53  ;;  %v361_v5 = vmul.f32 %v1541_v16, %v291_v59  ;;  %v363_v6 = vmul.f32 %v1541_v16, %v293_v60  ;;  %v392_v7 = vmul.f32 %v1534_v12, %v322_v63 }
  0x23   : > { %v394_v8 = vmul.f32 %v1534_v12, %v324_v0  ;;  %v393_v9 = vmul.f32 %v1541_v16, %v323_v1  ;;  %v432_v13 = vadd.f32 %v1550_v24, %v362_v4  ;;  %v364_v43 = vmul.f32 %v1534_v12, %v294_v33 }
  0x24   : > { %722 = vmatpush.bf16.msra.mxu0 %v1385_v10  ;;  %1402 = vmatpush.bf16.msra.mxu2 %v1385_v10  ;;  %v395_v10 = vmul.f32 %v1541_v16, %v325_v2  ;;  %v431_v14 = vadd.f32 %v1552_v25, %v361_v5  ;;  %v433_v15 = vadd.f32 %v1552_v25, %v363_v6  ;;  %v298_v5 = vld [vmem:[%s1487_s8 + $0x60] sm:$0xff]  ;;  %v300_v6 = vld [vmem:[%s1487_s8 + $0x70] sm:$0xff] }
  0x25   : > { %811 = vmatpush.bf16.msra.mxu1 %v1393_v11  ;;  %1410 = vmatpush.bf16.msra.mxu3 %v1393_v11  ;;  %v430_v11 = vadd.f32 %v1550_v24, %v360_v3  ;;  %v462_v17 = vadd.f32 %v1550_v24, %v392_v7  ;;  %v464_v18 = vadd.f32 %v1550_v24, %v394_v8  ;;  %v496_v22 = vmax.f32 %v432_v13, 0.0  ;;  %v299_v7 = vld [vmem:[%s1487_s8 + $0x68] sm:$0xff]  ;;  %v301_v8 = vld [vmem:[%s1487_s8 + $0x78] sm:$0xff]  ;;  %v332_v13 = vld [vmem:[%s1487_s8 + $0x170] sm:$0xff] }
  0x26   : > { %v463_v19 = vadd.f32 %v1552_v25, %v393_v9  ;;  %v465_v20 = vadd.f32 %v1552_v25, %v395_v10  ;;  %v495_v23 = vmax.f32 %v431_v14, 0.0  ;;  %v497_v26 = vmax.f32 %v433_v15, 0.0  ;;  %v331_v14 = vld [vmem:[%s1487_s8 + $0x168] sm:$0xff]  ;;  %v333_v15 = vld [vmem:[%s1487_s8 + $0x178] sm:$0xff] }
  0x27   : > { %v494_v21 = vmax.f32 %v430_v11, 0.0  ;;  %v526_v27 = vmax.f32 %v462_v17, 0.0  ;;  %v528_v28 = vmax.f32 %v464_v18, 0.0  ;;  %v366_v44 = vmul.f32 %v1534_v12, %v296_v34  ;;  %v330_v11 = vld [vmem:[%s1487_s8 + $0x160] sm:$0xff] }
  0x28   : > { %723 = vmatpush.bf16.msra.mxu0 %v1384_v30  ;;  %1403 = vmatpush.bf16.msra.mxu2 %v1384_v30  ;;  %v527_v29 = vmax.f32 %v463_v19, 0.0  ;;  %v529_v30 = vmax.f32 %v465_v20, 0.0  ;;  %v557_v32 = vpack.c.bf16 %v497_v26, %v495_v23  ;;  %v365_v45 = vmul.f32 %v1541_v16, %v295_v35 }
  0x29   : > { %812 = vmatpush.bf16.msra.mxu1 %v1392_v31  ;;  %1411 = vmatpush.bf16.msra.mxu3 %v1392_v31  ;;  %v556_v31 = vpack.c.bf16 %v496_v22, %v494_v21  ;;  %v572_v37 = vpack.c.bf16 %v528_v28, %v526_v27  ;;  %v367_v46 = vmul.f32 %v1541_v16, %v297_v36 }
  0x2a   : > { %v573_v38 = vpack.c.bf16 %v529_v30, %v527_v29  ;;  %v396_v47 = vmul.f32 %v1534_v12, %v326_v39  ;;  %v434_v51 = vadd.f32 %v1550_v24, %v364_v43  ;;  %v436_v52 = vadd.f32 %v1550_v24, %v366_v44 }
  0x2b   : > { %v435_v53 = vadd.f32 %v1552_v25, %v365_v45  ;;  %v437_v54 = vadd.f32 %v1552_v25, %v367_v46  ;;  %v368_v17 = vmul.f32 %v1534_v12, %v298_v5  ;;  %v370_v18 = vmul.f32 %v1534_v12, %v300_v6  ;;  %v302_v45 = vld [vmem:[%s1487_s8 + $0x80] sm:$0xff]  ;;  %v304_v46 = vld [vmem:[%s1487_s8 + $0x90] sm:$0xff] }
  0x2c   : > { %724 = vmatpush.bf16.msra.mxu0 %v1383_v40  ;;  %1404 = vmatpush.bf16.msra.mxu2 %v1383_v40  ;;  %v328_v40 = vld [vmem:[%s1487_s8 + $0x150] sm:$0xff]  ;;  %v498_v59 = vmax.f32 %v434_v51, 0.0  ;;  %v500_v60 = vmax.f32 %v436_v52, 0.0  ;;  %v369_v19 = vmul.f32 %v1541_v16, %v299_v7  ;;  %v371_v20 = vmul.f32 %v1541_v16, %v301_v8  ;;  %v334_v51 = vld [vmem:[%s1487_s8 + $0x180] sm:$0xff] }
  0x2d   : > { %813 = vmatpush.bf16.msra.mxu1 %v1391_v41  ;;  %1412 = vmatpush.bf16.msra.mxu3 %v1391_v41  ;;  %v327_v41 = vld [vmem:[%s1487_s8 + $0x148] sm:$0xff]  ;;  %v398_v48 = vmul.f32 %v1534_v12, %v328_v40  ;;  %v400_v21 = vmul.f32 %v1534_v12, %v330_v11  ;;  %v402_v22 = vmul.f32 %v1534_v12, %v332_v13  ;;  %v336_v52 = vld [vmem:[%s1487_s8 + $0x190] sm:$0xff] }
  0x2e   : > { %v558_v3 = vpack.c.bf16 %v500_v60, %v498_v59  ;;  %v401_v23 = vmul.f32 %v1541_v16, %v331_v14  ;;  %v403_v26 = vmul.f32 %v1541_v16, %v333_v15  ;;  %v438_v27 = vadd.f32 %v1550_v24, %v368_v17 }
  0x2f   : > { %v440_v28 = vadd.f32 %v1550_v24, %v370_v18  ;;  %v439_v29 = vadd.f32 %v1552_v25, %v369_v19  ;;  %v441_v30 = vadd.f32 %v1552_v25, %v371_v20  ;;  %v404_v59 = vmul.f32 %v1534_v12, %v334_v51  ;;  %v306_v19 = vld [vmem:[%s1487_s8 + $0xa0] sm:$0xff]  ;;  %v308_v20 = vld [vmem:[%s1487_s8 + $0xb0] sm:$0xff] }
  0x30   : > { %725 = vmatpush.bf16.msra.mxu0 %v1382_v49  ;;  %1405 = vmatpush.bf16.msra.mxu2 %v1382_v49  ;;  %v397_v49 = vmul.f32 %v1541_v16, %v327_v41  ;;  %v471_v33 = vadd.f32 %v1552_v25, %v401_v23  ;;  %v473_v34 = vadd.f32 %v1552_v25, %v403_v26  ;;  %v502_v35 = vmax.f32 %v438_v27, 0.0  ;;  %v338_v27 = vld [vmem:[%s1487_s8 + $0x1a0] sm:$0xff] }
  0x31   : > { %814 = vmatpush.bf16.msra.mxu1 %v1390_v50  ;;  %1413 = vmatpush.bf16.msra.mxu3 %v1390_v50  ;;  %v399_v50 = vmul.f32 %v1541_v16, %v329_v42  ;;  %v504_v36 = vmax.f32 %v440_v28, 0.0  ;;  %v406_v60 = vmul.f32 %v1534_v12, %v336_v52  ;;  %v340_v28 = vld [vmem:[%s1487_s8 + $0x1b0] sm:$0xff] }
  0x32   : > { %v467_v57 = vadd.f32 %v1552_v25, %v397_v49  ;;  %v535_v41 = vmax.f32 %v471_v33, 0.0  ;;  %v537_v42 = vmax.f32 %v473_v34, 0.0 }
  0x33   : > { %726 = vmatmul.bf16.vlgmr.msra.gmra.mxu0 %v554_v55  ;;  %766 = vmatmul.bf16.vlgmr.msra.gmra.mxu2 %v570_v61  ;;  %v466_v55 = vadd.f32 %v1550_v24, %v396_v47  ;;  %v469_v58 = vadd.f32 %v1552_v25, %v399_v50  ;;  %v499_v61 = vmax.f32 %v435_v53, 0.0  ;;  %v560_v43 = vpack.c.bf16 %v504_v36, %v502_v35  ;;  %v303_v47 = vld [vmem:[%s1487_s8 + $0x88] sm:$0xff] }
  0x34   : > { %815 = vmatmul.bf16.vlgmr.msra.gmra.mxu1 %v555_v56  ;;  %855 = vmatmul.bf16.vlgmr.msra.gmra.mxu3 %v571_v62  ;;  %v468_v56 = vadd.f32 %v1550_v24, %v398_v48  ;;  %v501_v62 = vmax.f32 %v437_v54, 0.0  ;;  %v531_v1 = vmax.f32 %v467_v57, 0.0  ;;  %v305_v48 = vld [vmem:[%s1487_s8 + $0x98] sm:$0xff]  ;;  %v577_v50 = vpack.c.bf16 %v537_v42, %v535_v41  ;;  %v335_v53 = vld [vmem:[%s1487_s8 + $0x188] sm:$0xff] }
  0x35   : > { %v530_v63 = vmax.f32 %v466_v55, 0.0  ;;  %v533_v2 = vmax.f32 %v469_v58, 0.0  ;;  %v337_v54 = vld [vmem:[%s1487_s8 + $0x198] sm:$0xff]  ;;  %v372_v55 = vmul.f32 %v1534_v12, %v302_v45  ;;  %v373_v57 = vmul.f32 %v1541_v16, %v303_v47 }
  0x36   : > { %v532_v0 = vmax.f32 %v468_v56, 0.0  ;;  %v559_v4 = vpack.c.bf16 %v501_v62, %v499_v61  ;;  %v374_v56 = vmul.f32 %v1534_v12, %v304_v46  ;;  %v375_v58 = vmul.f32 %v1541_v16, %v305_v48 }
  0x37   : > { %v575_v10 = vpack.c.bf16 %v533_v2, %v531_v1  ;;  %v405_v61 = vmul.f32 %v1541_v16, %v335_v53  ;;  %v407_v62 = vmul.f32 %v1541_v16, %v337_v54  ;;  %v443_v1 = vadd.f32 %v1552_v25, %v373_v57  ;;  %v310_v57 = vld [vmem:[%s1487_s8 + $0xc0] sm:$0xff] }
  0x38   : > { %v574_v9 = vpack.c.bf16 %v532_v0, %v530_v63  ;;  %v442_v63 = vadd.f32 %v1550_v24, %v372_v55  ;;  %v444_v0 = vadd.f32 %v1550_v24, %v374_v56  ;;  %v445_v2 = vadd.f32 %v1552_v25, %v375_v58  ;;  %v312_v58 = vld [vmem:[%s1487_s8 + $0xd0] sm:$0xff] }
  0x39   : > { %v475_v5 = vadd.f32 %v1552_v25, %v405_v61  ;;  %v477_v6 = vadd.f32 %v1552_v25, %v407_v62  ;;  %v408_v35 = vmul.f32 %v1534_v12, %v338_v27  ;;  %v410_v36 = vmul.f32 %v1534_v12, %v340_v28 }
  0x3a   : > { %v506_v7 = vmax.f32 %v442_v63, 0.0  ;;  %v508_v8 = vmax.f32 %v444_v0, 0.0  ;;  %v342_v63 = vld [vmem:[%s1487_s8 + $0x1c0] sm:$0xff]  ;;  %v344_v0 = vld [vmem:[%s1487_s8 + $0x1d0] sm:$0xff] }
  0x3b   : > { %v539_v14 = vmax.f32 %v475_v5, 0.0  ;;  %v541_v15 = vmax.f32 %v477_v6, 0.0 }
  0x3c   : > { %v562_v17 = vpack.c.bf16 %v508_v8, %v506_v7  ;;  %v412_v7 = vmul.f32 %v1534_v12, %v342_v63  ;;  %v414_v8 = vmul.f32 %v1534_v12, %v344_v0 }
  0x3d   : > { %v579_v26 = vpack.c.bf16 %v541_v15, %v539_v14 }
  0x43   : > { %731 = vmatmul.bf16.gmra.mxu0 %v556_v31  ;;  %771 = vmatmul.bf16.gmra.mxu2 %v572_v37  ;;  %v470_v31 = vadd.f32 %v1550_v24, %v400_v21  ;;  %v503_v37 = vmax.f32 %v439_v29, 0.0  ;;  %v307_v21 = vld [vmem:[%s1487_s8 + $0xa8] sm:$0xff] }
  0x44   : > { %820 = vmatmul.bf16.gmra.mxu1 %v557_v32  ;;  %860 = vmatmul.bf16.gmra.mxu3 %v573_v38  ;;  %v472_v32 = vadd.f32 %v1550_v24, %v402_v22  ;;  %v505_v38 = vmax.f32 %v441_v30, 0.0  ;;  %v309_v22 = vld [vmem:[%s1487_s8 + $0xb8] sm:$0xff]  ;;  %v339_v29 = vld [vmem:[%s1487_s8 + $0x1a8] sm:$0xff]  ;;  %v377_v33 = vmul.f32 %v1541_v16, %v307_v21 }
  0x45   : > { %v534_v39 = vmax.f32 %v470_v31, 0.0  ;;  %v341_v30 = vld [vmem:[%s1487_s8 + $0x1b8] sm:$0xff]  ;;  %v376_v31 = vmul.f32 %v1534_v12, %v306_v19  ;;  %v379_v34 = vmul.f32 %v1541_v16, %v309_v22 }
  0x46   : > { %v536_v40 = vmax.f32 %v472_v32, 0.0  ;;  %v561_v44 = vpack.c.bf16 %v505_v38, %v503_v37  ;;  %v378_v32 = vmul.f32 %v1534_v12, %v308_v20  ;;  %v409_v37 = vmul.f32 %v1541_v16, %v339_v29 }
  0x47   : > { %v411_v38 = vmul.f32 %v1541_v16, %v341_v30  ;;  %v447_v41 = vadd.f32 %v1552_v25, %v377_v33  ;;  %v449_v42 = vadd.f32 %v1552_v25, %v379_v34  ;;  %v314_v33 = vld [vmem:[%s1487_s8 + $0xe0] sm:$0xff]  ;;  %v316_v34 = vld [vmem:[%s1487_s8 + $0xf0] sm:$0xff] }
  0x48   : > { %v576_v49 = vpack.c.bf16 %v536_v40, %v534_v39  ;;  %v446_v39 = vadd.f32 %v1550_v24, %v376_v31  ;;  %v448_v40 = vadd.f32 %v1550_v24, %v378_v32  ;;  %v479_v45 = vadd.f32 %v1552_v25, %v409_v37 }
  0x49   : > { %v481_v46 = vadd.f32 %v1552_v25, %v411_v38 }
  0x4a   : > { %v510_v47 = vmax.f32 %v446_v39, 0.0  ;;  %v512_v48 = vmax.f32 %v448_v40, 0.0  ;;  %v543_v53 = vmax.f32 %v479_v45, 0.0  ;;  %v346_v39 = vld [vmem:[%s1487_s8 + $0x1e0] sm:$0xff]  ;;  %v348_v40 = vld [vmem:[%s1487_s8 + $0x1f0] sm:$0xff] }
  0x4b   : > { %v545_v54 = vmax.f32 %v481_v46, 0.0 }
  0x4c   : > { %v564_v55 = vpack.c.bf16 %v512_v48, %v510_v47  ;;  %v416_v47 = vmul.f32 %v1534_v12, %v346_v39  ;;  %v418_v48 = vmul.f32 %v1534_v12, %v348_v40 }
  0x4d   : > { %v581_v62 = vpack.c.bf16 %v545_v54, %v543_v53 }
  0x53   : > { %736 = vmatmul.bf16.gmra.mxu0 %v558_v3  ;;  %776 = vmatmul.bf16.gmra.mxu2 %v574_v9  ;;  %v474_v3 = vadd.f32 %v1550_v24, %v404_v59  ;;  %v507_v9 = vmax.f32 %v443_v1, 0.0  ;;  %v311_v59 = vld [vmem:[%s1487_s8 + $0xc8] sm:$0xff] }
  0x54   : > { %825 = vmatmul.bf16.gmra.mxu1 %v559_v4  ;;  %865 = vmatmul.bf16.gmra.mxu3 %v575_v10  ;;  %v476_v4 = vadd.f32 %v1550_v24, %v406_v60  ;;  %v509_v10 = vmax.f32 %v445_v2, 0.0  ;;  %v313_v60 = vld [vmem:[%s1487_s8 + $0xd8] sm:$0xff]  ;;  %v343_v1 = vld [vmem:[%s1487_s8 + $0x1c8] sm:$0xff]  ;;  %v381_v5 = vmul.f32 %v1541_v16, %v311_v59 }
  0x55   : > { %v538_v11 = vmax.f32 %v474_v3, 0.0  ;;  %v345_v2 = vld [vmem:[%s1487_s8 + $0x1d8] sm:$0xff]  ;;  %v380_v3 = vmul.f32 %v1534_v12, %v310_v57  ;;  %v383_v6 = vmul.f32 %v1541_v16, %v313_v60 }
  0x56   : > { %v540_v13 = vmax.f32 %v476_v4, 0.0  ;;  %v563_v18 = vpack.c.bf16 %v509_v10, %v507_v9  ;;  %v382_v4 = vmul.f32 %v1534_v12, %v312_v58  ;;  %v413_v9 = vmul.f32 %v1541_v16, %v343_v1 }
  0x57   : > { %v415_v10 = vmul.f32 %v1541_v16, %v345_v2  ;;  %v451_v14 = vadd.f32 %v1552_v25, %v381_v5  ;;  %v453_v15 = vadd.f32 %v1552_v25, %v383_v6 }
  0x58   : > { %v578_v23 = vpack.c.bf16 %v540_v13, %v538_v11  ;;  %v450_v11 = vadd.f32 %v1550_v24, %v380_v3  ;;  %v452_v13 = vadd.f32 %v1550_v24, %v382_v4  ;;  %v483_v19 = vadd.f32 %v1552_v25, %v413_v9 }
  0x59   : > { %v485_v20 = vadd.f32 %v1552_v25, %v415_v10  ;;  %v1764_v9 = vstv %s1378_s15 }
  0x5a   : > { %v514_v21 = vmax.f32 %v450_v11, 0.0  ;;  %v516_v22 = vmax.f32 %v452_v13, 0.0  ;;  %v547_v29 = vmax.f32 %v483_v19, 0.0 }
  0x5b   : > { %v549_v30 = vmax.f32 %v485_v20, 0.0 }
  0x5c   : > { %v566_v31 = vpack.c.bf16 %v516_v22, %v514_v21 }
  0x5d   : > { %v583_v38 = vpack.c.bf16 %v549_v30, %v547_v29 }
  0x63   : > { %741 = vmatmul.bf16.gmra.mxu0 %v560_v43  ;;  %781 = vmatmul.bf16.gmra.mxu2 %v576_v49  ;;  %v478_v43 = vadd.f32 %v1550_v24, %v408_v35  ;;  %v511_v49 = vmax.f32 %v447_v41, 0.0  ;;  %v315_v35 = vld [vmem:[%s1487_s8 + $0xe8] sm:$0xff] }
  0x64   : > { %830 = vmatmul.bf16.gmra.mxu1 %v561_v44  ;;  %870 = vmatmul.bf16.gmra.mxu3 %v577_v50  ;;  %v480_v44 = vadd.f32 %v1550_v24, %v410_v36  ;;  %v513_v50 = vmax.f32 %v449_v42, 0.0  ;;  %v317_v36 = vld [vmem:[%s1487_s8 + $0xf8] sm:$0xff]  ;;  %v347_v41 = vld [vmem:[%s1487_s8 + $0x1e8] sm:$0xff]  ;;  %v385_v45 = vmul.f32 %v1541_v16, %v315_v35 }
  0x65   : > { %v542_v51 = vmax.f32 %v478_v43, 0.0  ;;  %v349_v42 = vld [vmem:[%s1487_s8 + $0x1f8] sm:$0xff]  ;;  %v384_v43 = vmul.f32 %v1534_v12, %v314_v33  ;;  %v387_v46 = vmul.f32 %v1541_v16, %v317_v36 }
  0x66   : > { %v544_v52 = vmax.f32 %v480_v44, 0.0  ;;  %v565_v56 = vpack.c.bf16 %v513_v50, %v511_v49  ;;  %v386_v44 = vmul.f32 %v1534_v12, %v316_v34  ;;  %v417_v49 = vmul.f32 %v1541_v16, %v347_v41 }
  0x67   : > { %v419_v50 = vmul.f32 %v1541_v16, %v349_v42  ;;  %v455_v53 = vadd.f32 %v1552_v25, %v385_v45  ;;  %v457_v54 = vadd.f32 %v1552_v25, %v387_v46 }
  0x68   : > { %v580_v61 = vpack.c.bf16 %v544_v52, %v542_v51  ;;  %v454_v51 = vadd.f32 %v1550_v24, %v384_v43  ;;  %v456_v52 = vadd.f32 %v1550_v24, %v386_v44  ;;  %v487_v57 = vadd.f32 %v1552_v25, %v417_v49 }
  0x69   : > { %v489_v12 = vadd.f32 %v1552_v25, %v419_v50  ;;  %v519_v60 = vmax.f32 %v455_v53, 0.0  ;;  %v521_v16 = vmax.f32 %v457_v54, 0.0  ;;  %v1758_v25 = vld [vmem:[%s2020_s4] ss:$0 sm:$0xff] }
  0x6a   : > { %v518_v58 = vmax.f32 %v454_v51, 0.0  ;;  %v520_v59 = vmax.f32 %v456_v52, 0.0  ;;  %v551_v63 = vmax.f32 %v487_v57, 0.0 }
  0x6b   : > { %v553_v0 = vmax.f32 %v489_v12, 0.0  ;;  %v569_v2 = vpack.c.bf16 %v521_v16, %v519_v60 }
  0x6c   : > { %v568_v1 = vpack.c.bf16 %v520_v59, %v518_v58 }
  0x6d   : > { %v585_v4 = vpack.c.bf16 %v553_v0, %v551_v63 }
  0x73   : > { %746 = vmatmul.bf16.gmra.mxu0 %v562_v17  ;;  %786 = vmatmul.bf16.gmra.mxu2 %v578_v23  ;;  %v482_v17 = vadd.f32 %v1550_v24, %v412_v7  ;;  %v515_v23 = vmax.f32 %v451_v14, 0.0 }
  0x74   : > { %835 = vmatmul.bf16.gmra.mxu1 %v563_v18  ;;  %875 = vmatmul.bf16.gmra.mxu3 %v579_v26  ;;  %v484_v18 = vadd.f32 %v1550_v24, %v414_v8  ;;  %v517_v26 = vmax.f32 %v453_v15, 0.0 }
  0x75   : > { %v546_v27 = vmax.f32 %v482_v17, 0.0 }
  0x76   : > { %v548_v28 = vmax.f32 %v484_v18, 0.0  ;;  %v567_v32 = vpack.c.bf16 %v517_v26, %v515_v23 }
  0x78   : > { %v582_v37 = vpack.c.bf16 %v548_v28, %v546_v27 }
  0x83   : > { %751 = vmatmul.bf16.gmra.mxu0 %v564_v55  ;;  %791 = vmatmul.bf16.gmra.mxu2 %v580_v61  ;;  %v486_v55 = vadd.f32 %v1550_v24, %v416_v47 }
  0x84   : > { %840 = vmatmul.bf16.gmra.mxu1 %v565_v56  ;;  %880 = vmatmul.bf16.gmra.mxu3 %v581_v62  ;;  %v488_v56 = vadd.f32 %v1550_v24, %v418_v48  ;;  %v929_v24 = vlaneseq }
  0x85   : > { %v550_v61 = vmax.f32 %v486_v55, 0.0 }
  0x86   : > { %v552_v62 = vmax.f32 %v488_v56, 0.0  ;;  %v1761_v7 = vshrl.u32 %v929_v24, 7 }
  0x88   : > { %v584_v3 = vpack.c.bf16 %v552_v62, %v550_v61  ;;  %v931_v10 = vadd.s32 8, %v1761_v7  ;;  %v963_v13 = vadd.s32 %v1764_v9, %v1761_v7  ;;  %v932_v22 = vadd.s32 16, %v1761_v7 }
  0x89   : > { %v933_v40 = vadd.s32 24, %v1761_v7  ;;  %v934_v54 = vadd.s32 32, %v1761_v7 }
  0x8a   : > { %v964_v14 = vadd.s32 %v1764_v9, %v931_v10  ;;  %vm995_vm0 = vcmp.lt.s32.totalorder %v963_v13, 512 }
  0x8b   : > { %v966_v46 = vadd.s32 %v1764_v9, %v933_v40  ;;  %v967_v59 = vadd.s32 %v1764_v9, %v934_v54 }
  0x8c   : > { %vm996_vm1 = vcmp.lt.s32.totalorder %v964_v14, 512 }
  0x8d   : > { %vm998_vm3 = vcmp.lt.s32.totalorder %v966_v46, 512  ;;  %vm999_vm4 = vcmp.lt.s32.totalorder %v967_v59, 512 }
  0x93   : > { %756 = vmatmul.bf16.gmra.mxu0 %v566_v31  ;;  %796 = vmatmul.bf16.gmra.mxu2 %v582_v37 }
  0x94   : > { %845 = vmatmul.bf16.gmra.mxu1 %v567_v32  ;;  %885 = vmatmul.bf16.gmra.mxu3 %v583_v38  ;;  %v965_v32 = vadd.s32 %v1764_v9, %v932_v22 }
  0x96   : > { %vm997_vm2 = vcmp.lt.s32.totalorder %v965_v32, 512 }
  0xa3   : > { %761 = vmatmul.bf16.gmra.mxu0 %v568_v1  ;;  %801 = vmatmul.bf16.gmra.mxu2 %v584_v3 }
  0xa4   : > { %850 = vmatmul.bf16.gmra.mxu1 %v569_v2  ;;  %890 = vmatmul.bf16.gmra.mxu3 %v585_v4 }
  0xb0   : > { %v727_v5 = vpop.f32.mrf.mxu0 }
  0xb1   : > { %v816_v6 = vpop.f32.mrf.mxu1  ;;  %v728_v8 = vadd.f32 %v1758_v25, %v727_v5 }
  0xb3   : > { %v817_v11 = vadd.f32 %v816_v6, %v728_v8 }
  0xb5   : > { %896 = vst [vmem:[%s1492_s11] sm:$0xff] %v817_v11  ;;  %v1091_v26 = vsel %vm995_vm0, %v817_v11, 0.0 }
  0xb6   : > { %v767_v15 = vpop.f32.mrf.mxu2  ;;  %v1164_v29 = vmul.f32 %v1091_v26, %v1091_v26 }
  0xb7   : > { %v856_v17 = vpop.f32.mrf.mxu3  ;;  %v768_v20 = vadd.f32 %v1758_v25, %v767_v15 }
  0xb8   : > { %v729_v18 = vpop.f32.mrf.mxu0 }
  0xb9   : > { %v818_v19 = vpop.f32.mrf.mxu1  ;;  %v730_v21 = vadd.f32 %v1758_v25, %v729_v18  ;;  %v1774_v23 = vadd.f32 %v856_v17, %v768_v20 }
  0xbb   : > { %v819_v27 = vadd.f32 %v818_v19, %v730_v21  ;;  %912 = vst [vmem:[%s1492_s11 + $0x80] sm:$0xff] %v1774_v23 }
  0xbd   : > { %897 = vst [vmem:[%s1492_s11 + $0x8] sm:$0xff] %v819_v27  ;;  %v1092_v28 = vsel %vm996_vm1, %v819_v27, 0.0 }
  0xbe   : > { %v1124_v30 = vadd.f32 %v1092_v28, %v1091_v26  ;;  %v1165_v31 = vmul.f32 %v1092_v28, %v1092_v28  ;;  %v769_v33 = vpop.f32.mrf.mxu2 }
  0xbf   : > { %v858_v34 = vpop.f32.mrf.mxu3  ;;  %v770_v38 = vadd.f32 %v1758_v25, %v769_v33 }
  0xc0   : > { %v1196_v35 = vadd.f32 %v1165_v31, %v1164_v29  ;;  %v732_v36 = vpop.f32.mrf.mxu0 }
  0xc1   : > { %v821_v37 = vpop.f32.mrf.mxu1  ;;  %v733_v39 = vadd.f32 %v1758_v25, %v732_v36  ;;  %v1783_v41 = vadd.f32 %v858_v34, %v770_v38 }
  0xc3   : > { %v822_v42 = vadd.f32 %v821_v37, %v733_v39  ;;  %913 = vst [vmem:[%s1492_s11 + $0x88] sm:$0xff] %v1783_v41 }
  0xc5   : > { %898 = vst [vmem:[%s1492_s11 + $0x10] sm:$0xff] %v822_v42  ;;  %v1093_v43 = vsel %vm997_vm2, %v822_v42, 0.0 }
  0xc6   : > { %v1125_v44 = vadd.f32 %v1124_v30, %v1093_v43  ;;  %v1166_v45 = vmul.f32 %v1093_v43, %v1093_v43  ;;  %v772_v47 = vpop.f32.mrf.mxu2 }
  0xc7   : > { %v861_v48 = vpop.f32.mrf.mxu3  ;;  %v773_v52 = vadd.f32 %v1758_v25, %v772_v47 }
  0xc8   : > { %v1197_v49 = vadd.f32 %v1196_v35, %v1166_v45  ;;  %v734_v50 = vpop.f32.mrf.mxu0 }
  0xc9   : > { %v823_v51 = vpop.f32.mrf.mxu1  ;;  %v735_v53 = vadd.f32 %v1758_v25, %v734_v50  ;;  %v1792_v55 = vadd.f32 %v861_v48, %v773_v52 }
  0xcb   : > { %v824_v56 = vadd.f32 %v823_v51, %v735_v53  ;;  %914 = vst [vmem:[%s1492_s11 + $0x90] sm:$0xff] %v1792_v55 }
  0xcd   : > { %899 = vst [vmem:[%s1492_s11 + $0x18] sm:$0xff] %v824_v56  ;;  %v1094_v57 = vsel %vm998_vm3, %v824_v56, 0.0 }
  0xce   : > { %v1126_v12 = vadd.f32 %v1125_v44, %v1094_v57  ;;  %v1167_v58 = vmul.f32 %v1094_v57, %v1094_v57  ;;  %v774_v60 = vpop.f32.mrf.mxu2 }
  0xcf   : > { %v863_v16 = vpop.f32.mrf.mxu3  ;;  %v775_v0 = vadd.f32 %v1758_v25, %v774_v60 }
  0xd0   : > { %v1198_v61 = vadd.f32 %v1197_v49, %v1167_v58  ;;  %v737_v62 = vpop.f32.mrf.mxu0 }
  0xd1   : > { %v826_v63 = vpop.f32.mrf.mxu1  ;;  %v738_v1 = vadd.f32 %v1758_v25, %v737_v62  ;;  %v1800_v2 = vadd.f32 %v863_v16, %v775_v0 }
  0xd3   : > { %v827_v3 = vadd.f32 %v826_v63, %v738_v1  ;;  %915 = vst [vmem:[%s1492_s11 + $0x98] sm:$0xff] %v1800_v2 }
  0xd5   : > { %900 = vst [vmem:[%s1492_s11 + $0x20] sm:$0xff] %v827_v3  ;;  %v1095_v4 = vsel %vm999_vm4, %v827_v3, 0.0 }
  0xd6   : > { %v1805_v24 = vadd.f32 %v1126_v12, %v1095_v4  ;;  %v1168_v5 = vmul.f32 %v1095_v4, %v1095_v4  ;;  %v777_v6 = vpop.f32.mrf.mxu2  ;;  %v935_v4 = vadd.s32 40, %v1761_v7 }
  0xd7   : > { %v866_v8 = vpop.f32.mrf.mxu3  ;;  %v778_v14 = vadd.f32 %v1758_v25, %v777_v6 }
  0xd8   : > { %v1807_v10 = vadd.f32 %v1198_v61, %v1168_v5  ;;  %v739_v11 = vpop.f32.mrf.mxu0 }
  0xd9   : > { %v828_v13 = vpop.f32.mrf.mxu1  ;;  %v740_v15 = vadd.f32 %v1758_v25, %v739_v11  ;;  %v1811_v17 = vadd.f32 %v866_v8, %v778_v14  ;;  %v936_v8 = vadd.s32 48, %v1761_v7  ;;  %v937_v14 = vadd.s32 56, %v1761_v7 }
  0xdb   : > { %v1813_v18 = vadd.f32 %v828_v13, %v740_v15  ;;  %916 = vst [vmem:[%s1492_s11 + $0xa0] sm:$0xff] %v1811_v17  ;;  %v968_v13 = vadd.s32 %v1764_v9, %v935_v4  ;;  %v969_v15 = vadd.s32 %v1764_v9, %v936_v8  ;;  %v944_v4 = vadd.s32 112, %v1761_v7 }
  0xdd   : > { %901 = vst [vmem:[%s1492_s11 + $0x28] sm:$0xff] %v1813_v18  ;;  %vm1000_vm5 = vcmp.lt.s32.totalorder %v968_v13, 512  ;;  %vm1001_vm6 = vcmp.lt.s32.totalorder %v969_v15, 512  ;;  %v947_v13 = vadd.s32 136, %v1761_v7 }
  0xde   : > { %v779_v19 = vpop.f32.mrf.mxu2 }
  0xdf   : > { %v868_v20 = vpop.f32.mrf.mxu3  ;;  %v780_v26 = vadd.f32 %v1758_v25, %v779_v19  ;;  %v938_v19 = vadd.s32 64, %v1761_v7 }
  0xe0   : > { %v742_v21 = vpop.f32.mrf.mxu0 }
  0xe1   : > { %v831_v22 = vpop.f32.mrf.mxu1  ;;  %v743_v27 = vadd.f32 %v1758_v25, %v742_v21  ;;  %v1821_v28 = vadd.f32 %v868_v20, %v780_v26 }
  0xe3   : > { %v1823_v29 = vadd.f32 %v831_v22, %v743_v27  ;;  %917 = vst [vmem:[%s1492_s11 + $0xa8] sm:$0xff] %v1821_v28 }
  0xe5   : > { %902 = vst [vmem:[%s1492_s11 + $0x30] sm:$0xff] %v1823_v29 }
  0xe6   : > { %v782_v30 = vpop.f32.mrf.mxu2 }
  0xe7   : > { %v871_v31 = vpop.f32.mrf.mxu3  ;;  %v783_v34 = vadd.f32 %v1758_v25, %v782_v30  ;;  %v970_v30 = vadd.s32 %v1764_v9, %v937_v14 }
  0xe8   : > { %v744_v32 = vpop.f32.mrf.mxu0 }
  0xe9   : > { %v833_v33 = vpop.f32.mrf.mxu1  ;;  %v745_v35 = vadd.f32 %v1758_v25, %v744_v32  ;;  %v1831_v36 = vadd.f32 %v871_v31, %v783_v34  ;;  %v939_v31 = vadd.s32 72, %v1761_v7  ;;  %v971_v34 = vadd.s32 %v1764_v9, %v938_v19 }
  0xea   : > { %vm1002_vm7 = vcmp.lt.s32.totalorder %v970_v30, 512 }
  0xeb   : > { %v1833_v37 = vadd.f32 %v833_v33, %v745_v35  ;;  %918 = vst [vmem:[%s1492_s11 + $0xb0] sm:$0xff] %v1831_v36  ;;  %vm1003_vm8 = vcmp.lt.s32.totalorder %v971_v34, 512 }
  0xed   : > { %903 = vst [vmem:[%s1492_s11 + $0x38] sm:$0xff] %v1833_v37 }
  0xee   : > { %v784_v38 = vpop.f32.mrf.mxu2 }
  0xef   : > { %v873_v39 = vpop.f32.mrf.mxu3  ;;  %v785_v43 = vadd.f32 %v1758_v25, %v784_v38  ;;  %v1096_v38 = vsel %vm1000_vm5, %v1813_v18, 0.0  ;;  %v946_v18 = vadd.s32 128, %v1761_v7 }
  0xf0   : > { %v747_v40 = vpop.f32.mrf.mxu0 }
  0xf1   : > { %v836_v42 = vpop.f32.mrf.mxu1  ;;  %v748_v44 = vadd.f32 %v1758_v25, %v747_v40  ;;  %v1841_v45 = vadd.f32 %v873_v39, %v785_v43  ;;  %v940_v39 = vadd.s32 80, %v1761_v7  ;;  %v972_v40 = vadd.s32 %v1764_v9, %v939_v31 }
  0xf2   : > { %v941_v43 = vadd.s32 88, %v1761_v7  ;;  %v979_v15 = vadd.s32 %v1764_v9, %v946_v18 }
  0xf3   : > { %v1843_v46 = vadd.f32 %v836_v42, %v748_v44  ;;  %919 = vst [vmem:[%s1492_s11 + $0xb8] sm:$0xff] %v1841_v45  ;;  %v1097_v42 = vsel %vm1001_vm6, %v1823_v29, 0.0  ;;  %v1169_v44 = vmul.f32 %v1096_v38, %v1096_v38  ;;  %v1128_v29 = vadd.f32 %v1805_v24, %v1096_v38 }
  0xf4   : > { %vm1004_vm9 = vcmp.lt.s32.totalorder %v972_v40, 512  ;;  %v945_v40 = vadd.s32 120, %v1761_v7  ;;  %vm1011_vm15 = vcmp.lt.s32.totalorder %v979_v15, 512 }
  0xf5   : > { %904 = vst [vmem:[%s1492_s11 + $0x40] sm:$0xff] %v1843_v46  ;;  %v1129_v24 = vadd.f32 %v1128_v29, %v1097_v42 }
  0xf6   : > { %v787_v47 = vpop.f32.mrf.mxu2 }
  0xf7   : > { %v876_v48 = vpop.f32.mrf.mxu3  ;;  %v788_v51 = vadd.f32 %v1758_v25, %v787_v47  ;;  %v942_v47 = vadd.s32 96, %v1761_v7 }
  0xf8   : > { %v749_v49 = vpop.f32.mrf.mxu0 }
  0xf9   : > { %v838_v50 = vpop.f32.mrf.mxu1  ;;  %v750_v52 = vadd.f32 %v1758_v25, %v749_v49  ;;  %v1851_v53 = vadd.f32 %v876_v48, %v788_v51  ;;  %v973_v51 = vadd.s32 %v1764_v9, %v940_v39 }
  0xfb   : > { %v1853_v54 = vadd.f32 %v838_v50, %v750_v52  ;;  %920 = vst [vmem:[%s1492_s11 + $0xc0] sm:$0xff] %v1851_v53  ;;  %v1098_v50 = vsel %vm1002_vm7, %v1833_v37, 0.0  ;;  %v943_v37 = vadd.s32 104, %v1761_v7  ;;  %vm1005_vm10 = vcmp.lt.s32.totalorder %v973_v51, 512 }
  0xfc   : > { %v1130_v14 = vadd.f32 %v1129_v24, %v1098_v50  ;;  %v949_v51 = vadd.s32 152, %v1761_v7 }
  0xfd   : > { %905 = vst [vmem:[%s1492_s11 + $0x48] sm:$0xff] %v1853_v54  ;;  %v1100_v8 = vsel %vm1004_vm9, %v1853_v54, 0.0  ;;  %v977_v54 = vadd.s32 %v1764_v9, %v944_v4 }
  0xfe   : > { %v789_v56 = vpop.f32.mrf.mxu2  ;;  %v982_v4 = vadd.s32 %v1764_v9, %v949_v51 }
  0xff   : > { %v878_v57 = vpop.f32.mrf.mxu3  ;;  %v790_v59 = vadd.f32 %v1758_v25, %v789_v56  ;;  %vm1009_vm14 = vcmp.lt.s32.totalorder %v977_v54, 512 }
 0x100   : > { %v752_v12 = vpop.f32.mrf.mxu0  ;;  %vm1014_vm3 = vcmp.lt.s32.totalorder %v982_v4, 512 }
 0x101   : > { %v841_v58 = vpop.f32.mrf.mxu1  ;;  %v753_v60 = vadd.f32 %v1758_v25, %v752_v12  ;;  %v1861_v16 = vadd.f32 %v878_v57, %v790_v59  ;;  %v1170_v12 = vmul.f32 %v1097_v42, %v1097_v42  ;;  %v1099_v59 = vsel %vm1003_vm8, %v1843_v46, 0.0 }
 0x102   : > { %v1172_v46 = vmul.f32 %v1099_v59, %v1099_v59 }
 0x103   : > { %v1863_v61 = vadd.f32 %v841_v58, %v753_v60  ;;  %921 = vst [vmem:[%s1492_s11 + $0xc8] sm:$0xff] %v1861_v16  ;;  %v974_v60 = vadd.s32 %v1764_v9, %v941_v43 }
 0x105   : > { %906 = vst [vmem:[%s1492_s11 + $0x50] sm:$0xff] %v1863_v61  ;;  %vm1006_vm11 = vcmp.lt.s32.totalorder %v974_v60, 512 }
 0x106   : > { %v792_v62 = vpop.f32.mrf.mxu2 }
 0x107   : > { %v881_v63 = vpop.f32.mrf.mxu3  ;;  %v793_v3 = vadd.f32 %v1758_v25, %v792_v62 }
 0x108   : > { %v754_v0 = vpop.f32.mrf.mxu0 }
 0x109   : > { %v843_v1 = vpop.f32.mrf.mxu1  ;;  %v755_v5 = vadd.f32 %v1758_v25, %v754_v0  ;;  %v1872_v6 = vadd.f32 %v881_v63, %v793_v3  ;;  %v1200_v63 = vadd.f32 %v1807_v10, %v1169_v44  ;;  %v1171_v0 = vmul.f32 %v1098_v50, %v1098_v50 }
 0x10a   : > { %v976_v10 = vadd.s32 %v1764_v9, %v943_v37  ;;  %v980_v44 = vadd.s32 %v1764_v9, %v947_v13 }
 0x10b   : > { %v1875_v11 = vadd.f32 %v843_v1, %v755_v5  ;;  %922 = vst [vmem:[%s1492_s11 + $0xd0] sm:$0xff] %v1872_v6  ;;  %v975_v1 = vadd.s32 %v1764_v9, %v942_v47  ;;  %v1201_v5 = vadd.f32 %v1200_v63, %v1170_v12  ;;  %v948_v47 = vadd.s32 144, %v1761_v7 }
 0x10c   : > { %vm1008_vm13 = vcmp.lt.s32.totalorder %v976_v10, 512  ;;  %vm1012_vm0 = vcmp.lt.s32.totalorder %v980_v44, 512 }
 0x10d   : > { %907 = vst [vmem:[%s1492_s11 + $0x58] sm:$0xff] %v1875_v11  ;;  %v1202_v19 = vadd.f32 %v1201_v5, %v1171_v0  ;;  %vm1007_vm12 = vcmp.lt.s32.totalorder %v975_v1, 512  ;;  %v1102_v38 = vsel %vm1006_vm11, %v1875_v11, 0.0  ;;  %v951_v5 = vadd.s32 168, %v1761_v7 }
 0x10e   : > { %v794_v20 = vpop.f32.mrf.mxu2  ;;  %v1175_v50 = vmul.f32 %v1102_v38, %v1102_v38 }
 0x10f   : > { %v883_v21 = vpop.f32.mrf.mxu3  ;;  %v795_v27 = vadd.f32 %v1758_v25, %v794_v20  ;;  %v1101_v20 = vsel %vm1005_vm10, %v1863_v61, 0.0  ;;  %v1203_v34 = vadd.f32 %v1202_v19, %v1172_v46  ;;  %v984_v54 = vadd.s32 %v1764_v9, %v951_v5 }
 0x110   : > { %v757_v22 = vpop.f32.mrf.mxu0  ;;  %v1174_v42 = vmul.f32 %v1101_v20, %v1101_v20 }
 0x111   : > { %v846_v26 = vpop.f32.mrf.mxu1  ;;  %v758_v32 = vadd.f32 %v1758_v25, %v757_v22  ;;  %v1889_v33 = vadd.f32 %v883_v21, %v795_v27  ;;  %v1173_v27 = vmul.f32 %v1100_v8, %v1100_v8  ;;  %vm1016_vm5 = vcmp.lt.s32.totalorder %v984_v54, 512 }
 0x112   : > { %v960_v54 = vadd.s32 240, %v1761_v7 }
 0x113   : > { %v1892_v35 = vadd.f32 %v846_v26, %v758_v32  ;;  %923 = vst [vmem:[%s1492_s11 + $0xd8] sm:$0xff] %v1889_v33  ;;  %v1131_v26 = vadd.f32 %v1130_v14, %v1099_v59  ;;  %v1204_v18 = vadd.f32 %v1203_v34, %v1173_v27 }
 0x115   : > { %908 = vst [vmem:[%s1492_s11 + $0x60] sm:$0xff] %v1892_v35  ;;  %v1132_v61 = vadd.f32 %v1131_v26, %v1100_v8  ;;  %v1107_v26 = vsel %vm1011_vm15, %v1774_v23, 0.0 }
 0x116   : > { %v797_v48 = vpop.f32.mrf.mxu2  ;;  %v1180_v23 = vmul.f32 %v1107_v26, %v1107_v26 }
 0x117   : > { %v886_v49 = vpop.f32.mrf.mxu3  ;;  %v798_v57 = vadd.f32 %v1758_v25, %v797_v48  ;;  %v1103_v48 = vsel %vm1007_vm12, %v1892_v35, 0.0  ;;  %v1133_v11 = vadd.f32 %v1132_v61, %v1101_v20  ;;  %v981_v35 = vadd.s32 %v1764_v9, %v948_v47 }
 0x118   : > { %v759_v52 = vpop.f32.mrf.mxu0  ;;  %v1176_v12 = vmul.f32 %v1103_v48, %v1103_v48 }
 0x119   : > { %v848_v56 = vpop.f32.mrf.mxu1  ;;  %v760_v58 = vadd.f32 %v1758_v25, %v759_v52  ;;  %v1913_v62 = vadd.f32 %v886_v49, %v798_v57  ;;  %v1205_v57 = vadd.f32 %v1204_v18, %v1174_v42  ;;  %v1134_v29 = vadd.f32 %v1133_v11, %v1102_v38 }
 0x11a   : > { %vm1013_vm2 = vcmp.lt.s32.totalorder %v981_v35, 512  ;;  %v1110_v11 = vsel %vm1014_vm3, %v1800_v2, 0.0 }
 0x11b   : > { %v849_v3 = vadd.f32 %v848_v56, %v760_v58  ;;  %924 = vst [vmem:[%s1492_s11 + $0xe0] sm:$0xff] %v1913_v62  ;;  %v978_v56 = vadd.s32 %v1764_v9, %v945_v40  ;;  %v950_v58 = vadd.s32 160, %v1761_v7  ;;  %v1206_v63 = vadd.f32 %v1205_v57, %v1175_v50 }
 0x11c   : > { %v1135_v0 = vadd.f32 %v1134_v29, %v1103_v48  ;;  %v1109_v40 = vsel %vm1013_vm2, %v1792_v55, 0.0  ;;  %v955_v55 = vadd.s32 200, %v1761_v7 }
 0x11d   : > { %909 = vst [vmem:[%s1492_s11 + $0x68] sm:$0xff] %v849_v3  ;;  %v1104_v52 = vsel %vm1008_vm13, %v849_v3, 0.0  ;;  %vm1010_vm1 = vcmp.lt.s32.totalorder %v978_v56, 512  ;;  %v1207_v8 = vadd.f32 %v1206_v63, %v1176_v12  ;;  %v983_v20 = vadd.s32 %v1764_v9, %v950_v58 }
 0x11e   : > { %v799_v21 = vpop.f32.mrf.mxu2  ;;  %v1177_v1 = vmul.f32 %v1104_v52, %v1104_v52  ;;  %v1136_v13 = vadd.f32 %v1135_v0, %v1104_v52  ;;  %v1182_v57 = vmul.f32 %v1109_v40, %v1109_v40  ;;  %v956_v12 = vadd.s32 208, %v1761_v7 }
 0x11f   : > { %v888_v22 = vpop.f32.mrf.mxu3  ;;  %v800_v32 = vadd.f32 %v1758_v25, %v799_v21  ;;  %v952_v21 = vadd.s32 176, %v1761_v7  ;;  %vm1015_vm4 = vcmp.lt.s32.totalorder %v983_v20, 512  ;;  %v1183_v58 = vmul.f32 %v1110_v11, %v1110_v11 }
 0x120   : > { %v762_v30 = vpop.f32.mrf.mxu0  ;;  %v1208_v27 = vadd.f32 %v1207_v8, %v1177_v1  ;;  %v1111_v29 = vsel %vm1015_vm4, %v1811_v17, 0.0  ;;  %v957_v1 = vadd.s32 216, %v1761_v7 }
 0x121   : > { %v851_v31 = vpop.f32.mrf.mxu1  ;;  %v763_v39 = vadd.f32 %v1758_v25, %v762_v30  ;;  %v1932_v43 = vadd.f32 %v888_v22, %v800_v32  ;;  %v953_v32 = vadd.s32 184, %v1761_v7  ;;  %v985_v61 = vadd.s32 %v1764_v9, %v952_v21 }
 0x122   : > { %v1184_v0 = vmul.f32 %v1111_v29, %v1111_v29 }
 0x123   : > { %v852_v49 = vadd.f32 %v851_v31, %v763_v39  ;;  %925 = vst [vmem:[%s1492_s11 + $0xe8] sm:$0xff] %v1932_v43  ;;  %v1108_v31 = vsel %vm1012_vm0, %v1783_v41, 0.0  ;;  %v954_v41 = vadd.s32 192, %v1761_v7  ;;  %v986_v50 = vadd.s32 %v1764_v9, %v953_v32 }
 0x124   : > { %v1181_v18 = vmul.f32 %v1108_v31, %v1108_v31  ;;  %vm1017_vm6 = vcmp.lt.s32.totalorder %v985_v61, 512  ;;  %v993_v61 = vadd.s32 %v1764_v9, %v960_v54 }
 0x125   : > { %910 = vst [vmem:[%s1492_s11 + $0x70] sm:$0xff] %v852_v49  ;;  %v1105_v59 = vsel %vm1009_vm14, %v852_v49, 0.0  ;;  %vm1018_vm7 = vcmp.lt.s32.totalorder %v986_v50, 512  ;;  %v1113_v17 = vsel %vm1017_vm6, %v1831_v36, 0.0  ;;  %v990_v36 = vadd.s32 %v1764_v9, %v957_v1 }
 0x126   : > { %v802_v60 = vpop.f32.mrf.mxu2  ;;  %v1178_v14 = vmul.f32 %v1105_v59, %v1105_v59  ;;  %v1137_v30 = vadd.f32 %v1136_v13, %v1105_v59  ;;  %v1112_v59 = vsel %vm1016_vm5, %v1821_v28, 0.0  ;;  %v958_v13 = vadd.s32 224, %v1761_v7 }
 0x127   : > { %v891_v37 = vpop.f32.mrf.mxu3  ;;  %v803_v3 = vadd.f32 %v1758_v25, %v802_v60  ;;  %v988_v60 = vadd.s32 %v1764_v9, %v955_v55  ;;  %v1185_v5 = vmul.f32 %v1112_v59, %v1112_v59  ;;  %vm1022_vm11 = vcmp.lt.s32.totalorder %v990_v36, 512 }
 0x128   : > { %v764_v24 = vpop.f32.mrf.mxu0  ;;  %v1209_v38 = vadd.f32 %v1208_v27, %v1178_v14  ;;  %v1186_v14 = vmul.f32 %v1113_v17, %v1113_v17  ;;  %vm1025_vm14 = vcmp.lt.s32.totalorder %v993_v61, 512 }
 0x129   : > { %v765_v46 = vadd.f32 %v1758_v25, %v764_v24  ;;  %v853_v10 = vpop.f32.mrf.mxu1  ;;  %v1949_v19 = vadd.f32 %v891_v37, %v803_v3  ;;  %v989_v24 = vadd.s32 %v1764_v9, %v956_v12  ;;  %vm1020_vm9 = vcmp.lt.s32.totalorder %v988_v60, 512 }
 0x12a   : > { %v1116_v27 = vsel %vm1020_vm9, %v1861_v16, 0.0 }
 0x12b   : > { %v854_v22 = vadd.f32 %v853_v10, %v765_v46  ;;  %926 = vst [vmem:[%s1492_s11 + $0xf0] sm:$0xff] %v1949_v19  ;;  %v1114_v46 = vsel %vm1018_vm7, %v1841_v45, 0.0  ;;  %vm1021_vm10 = vcmp.lt.s32.totalorder %v989_v24, 512  ;;  %v991_v45 = vadd.s32 %v1764_v9, %v958_v13 }
 0x12d   : > { %911 = vst [vmem:[%s1492_s11 + $0x78] sm:$0xff] %v854_v22  ;;  %v1106_v34 = vsel %vm1010_vm1, %v854_v22, 0.0  ;;  %v959_v22 = vadd.s32 232, %v1761_v7  ;;  %vm1023_vm12 = vcmp.lt.s32.totalorder %v991_v45, 512 }
 0x12e   : > { %v1138_v39 = vadd.f32 %v1137_v30, %v1106_v34  ;;  %v1179_v15 = vmul.f32 %v1106_v34, %v1106_v34  ;;  %v804_v42 = vpop.f32.mrf.mxu2  ;;  %v1117_v34 = vsel %vm1021_vm10, %v1872_v6, 0.0 }
 0x12f   : > { %v893_v44 = vpop.f32.mrf.mxu3  ;;  %v805_v49 = vadd.f32 %v1758_v25, %v804_v42  ;;  %v987_v25 = vadd.s32 %v1764_v9, %v954_v41  ;;  %v1190_v42 = vmul.f32 %v1117_v34, %v1117_v34 }
 0x130   : > { %v1139_v47 = vadd.f32 %v1138_v39, %v1107_v26  ;;  %v1210_v48 = vadd.f32 %v1209_v38, %v1179_v15  ;;  %v1187_v26 = vmul.f32 %v1114_v46, %v1114_v46  ;;  %v992_v39 = vadd.s32 %v1764_v9, %v959_v22 }
 0x131   : > { %v1970_v56 = vadd.f32 %v893_v44, %v805_v49  ;;  %vm1019_vm8 = vcmp.lt.s32.totalorder %v987_v25, 512  ;;  %v961_v15 = vadd.s32 248, %v1761_v7  ;;  %v1118_v44 = vsel %vm1022_vm11, %v1889_v33, 0.0 }
 0x132   : > { %v1140_v51 = vadd.f32 %v1139_v47, %v1108_v31  ;;  %v1211_v52 = vadd.f32 %v1210_v48, %v1180_v23  ;;  %v1115_v10 = vsel %vm1019_vm8, %v1851_v53, 0.0  ;;  %v1189_v23 = vmul.f32 %v1116_v27, %v1116_v27 }
 0x133   : > { %927 = vst [vmem:[%s1492_s11 + $0xf8] sm:$0xff] %v1970_v56  ;;  %v1188_v32 = vmul.f32 %v1115_v10, %v1115_v10  ;;  %vm1024_vm13 = vcmp.lt.s32.totalorder %v992_v39, 512  ;;  %v994_v6 = vadd.s32 %v1764_v9, %v961_v15  ;;  %v1119_v48 = vsel %vm1023_vm12, %v1913_v62, 0.0 }
 0x134   : > { %v1141_v35 = vadd.f32 %v1140_v51, %v1109_v40  ;;  %v1212_v2 = vadd.f32 %v1211_v52, %v1181_v18  ;;  %v1191_v49 = vmul.f32 %v1118_v44, %v1118_v44  ;;  %v1120_v7 = vsel %vm1024_vm13, %v1932_v43, 0.0 }
 0x135   : > { %v1192_v55 = vmul.f32 %v1119_v48, %v1119_v48  ;;  %vm1026_vm15 = vcmp.lt.s32.totalorder %v994_v6, 512  ;;  %v1121_v52 = vsel %vm1025_vm14, %v1949_v19, 0.0 }
 0x136   : > { %v1142_v37 = vadd.f32 %v1141_v35, %v1110_v11  ;;  %v1213_v63 = vadd.f32 %v1212_v2, %v1182_v57  ;;  %v1122_v25 = vsel %vm1026_vm15, %v1970_v56, 0.0  ;;  %v1194_v62 = vmul.f32 %v1121_v52, %v1121_v52  ;;  %v1123_v56 = vld [vmem:[%s2022_s6] sm:$0x1] }
 0x138   : > { %v1143_v3 = vadd.f32 %v1142_v37, %v1111_v29  ;;  %v1214_v4 = vadd.f32 %v1213_v63, %v1183_v58  ;;  %v1193_v29 = vmul.f32 %v1120_v7, %v1120_v7  ;;  %v1195_v58 = vmul.f32 %v1122_v25, %v1122_v25 }
 0x13a   : > { %v1144_v28 = vadd.f32 %v1143_v3, %v1112_v59  ;;  %v1215_v8 = vadd.f32 %v1214_v4, %v1184_v0 }
 0x13c   : > { %v1216_v20 = vadd.f32 %v1215_v8, %v1185_v5  ;;  %v1145_v21 = vadd.f32 %v1144_v28, %v1113_v17  ;;  %v1163_v5 = vld [vmem:[%s2023_s7] sm:$0x1] }
 0x13e   : > { %v1146_v30 = vadd.f32 %v1145_v21, %v1114_v46  ;;  %v1217_v31 = vadd.f32 %v1216_v20, %v1186_v14 }
 0x140   : > { %v1147_v53 = vadd.f32 %v1146_v30, %v1115_v10  ;;  %v1218_v38 = vadd.f32 %v1217_v31, %v1187_v26 }
 0x142   : > { %v1148_v40 = vadd.f32 %v1147_v53, %v1116_v27  ;;  %v1219_v16 = vadd.f32 %v1218_v38, %v1188_v32 }
 0x144   : > { %v1149_v41 = vadd.f32 %v1148_v40, %v1117_v34  ;;  %v1220_v47 = vadd.f32 %v1219_v16, %v1189_v23 }
 0x146   : > { %v1150_v18 = vadd.f32 %v1149_v41, %v1118_v44  ;;  %v1221_v11 = vadd.f32 %v1220_v47, %v1190_v42 }
 0x148   : > { %v1151_v50 = vadd.f32 %v1150_v18, %v1119_v48  ;;  %v1222_v51 = vadd.f32 %v1221_v11, %v1191_v49 }
 0x14a   : > { %v1223_v33 = vadd.f32 %v1222_v51, %v1192_v55  ;;  %v1152_v57 = vadd.f32 %v1151_v50, %v1120_v7 }
 0x14c   : > { %v1224_v9 = vadd.f32 %v1223_v33, %v1193_v29  ;;  %v1153_v12 = vadd.f32 %v1152_v57, %v1121_v52 }
 0x14e   : > { %v1225_v35 = vadd.f32 %v1224_v9, %v1194_v62  ;;  %v1154_v2 = vadd.f32 %v1153_v12, %v1122_v25 }
 0x150   : > { %v1155_v59 = vrot.slane %v1154_v2, 4  ;;  %v1226_v60 = vadd.f32 %v1225_v35, %v1195_v58 }
 0x152   : > { %v1156_v43 = vadd.f32 %v1155_v59, %v1154_v2  ;;  %v1227_v37 = vrot.slane %v1226_v60, 4 }
 0x154   : > { %v1157_v63 = vrot.slane %v1156_v43, 2  ;;  %v1228_v0 = vadd.f32 %v1227_v37, %v1226_v60 }
 0x156   : > { %v1158_v17 = vadd.f32 %v1157_v63, %v1156_v43  ;;  %v1229_v1 = vrot.slane %v1228_v0, 2 }
 0x158   : > { %v1159_v19 = vrot.slane %v1158_v17, 1  ;;  %v1230_v24 = vadd.f32 %v1229_v1, %v1228_v0 }
 0x15a   : > { %v1160_v3 = vadd.f32 %v1159_v19, %v1158_v17  ;;  %v1231_v4 = vrot.slane %v1230_v24, 1 }
 0x15c   : > { %v1161_v46 = vadd.f32 %v1160_v3, %v1123_v56  ;;  %v1232_v28 = vadd.f32 %v1231_v4, %v1230_v24 }
 0x15e   : > { %1162 = vst [vmem:[%s2022_s6] sm:$0x1] %v1161_v46  ;;  %v1233_v8 = vadd.f32 %v1232_v28, %v1163_v5 }
 0x160   : > { %1234 = vst [vmem:[%s2023_s7] sm:$0x1] %v1233_v8 }
 0x161 PF: > { %s18_s24 = sadd.s32 1, %s1430_s24  }
 0x162   : > { %p15_p5 = scmp.ge.s32.totalorder %s18_s24, 4  }
 0x164   :  { %17 = sbr.rel (!%p15_p5) target bundleno = 1 (0x1), region = 90 }

</bundles_post_ra>
